<compile_context>
chip_gen: v7x
topology: tpu7x:2x2x1
jax: 0.10.0
libtpu: 0.0.40
codegen_flags: <defaults>
</compile_context>

<pallas_src>
import numpy as np
import jax
import jax.numpy as jnp
from jax import lax
from jax.experimental import pallas as pl
from jax.experimental.pallas import tpu as pltpu

WINDOW_SIZE = 11
SIGMA = 1.5
C1 = 0.01 ** 2
C2 = 0.03 ** 2


def _gaussian_1d(window_size, sigma):
    # same construction as SSIMLoss.gaussian (deterministic, no checkpoint)
    g = np.array(
        [np.exp(-(x - window_size // 2) ** 2 / float(2 * sigma ** 2))
         for x in range(window_size)],
        dtype=np.float64,
    )
    g = g / g.sum()
    return g.astype(np.float32)


def _band_matrix(n, window_size, sigma):
    """(n, n) banded matrix M with M[i, r] = g[r - i + pad] (zero off-band).

    Left-multiplying by _band_matrix(H) and right-multiplying by
    _band_matrix(W).T reproduces the separable 'same' Gaussian conv with zero
    padding (pad = window_size // 2), i.e. F.conv2d(..., padding=pad).
    """
    g = _gaussian_1d(window_size, sigma)
    pad = window_size // 2
    m = np.zeros((n, n), dtype=np.float32)
    for i in range(n):
        for a in range(window_size):
            r = i + a - pad
            if 0 <= r < n:
                m[i, r] = g[a]
    return m


def _channels_per_block(nc, w, max_lanes=512):
    """Largest divisor B of nc with B*W <= max_lanes (lane-packing factor)."""
    best = 1
    for b in range(1, nc + 1):
        if nc % b == 0 and b * w <= max_lanes:
            best = b
    return best


def _make_ssim_kernel():
    def kernel(x1_ref, x2_ref, ah_ref, bw_ref, out_ref):
        x1 = x1_ref[0]          # (H, B*W)  B channels packed along lanes
        x2 = x2_ref[0]
        ah = ah_ref[...]        # (H, H)    vertical band matrix
        bw = bw_ref[...]        # (B*W, B*W) block-diagonal horizontal bands

        def gconv(q):
            # Depthwise 'same' Gaussian conv of all B lane-packed channels:
            # two MXU matmuls with f32 accumulation (VPU stays free for the
            # SSIM elementwise math).
            t = jnp.dot(ah, q, preferred_element_type=jnp.float32,
                        precision=lax.Precision.HIGHEST)
            return jnp.dot(t, bw, preferred_element_type=jnp.float32,
                           precision=lax.Precision.HIGHEST)

        mu1 = gconv(x1)
        mu2 = gconv(x2)
        s11 = gconv(x1 * x1)
        s22 = gconv(x2 * x2)
        s12 = gconv(x1 * x2)

        mu1_sq = mu1 * mu1
        mu2_sq = mu2 * mu2
        mu1_mu2 = mu1 * mu2
        sigma1_sq = s11 - mu1_sq
        sigma2_sq = s22 - mu2_sq
        sigma12 = s12 - mu1_mu2

        num = (2.0 * mu1_mu2 + C1) * (2.0 * sigma12 + C2)
        den = (mu1_sq + mu2_sq + C1) * (sigma1_sq + sigma2_sq + C2)
        ssim_map = num / den

        # Raw (unnormalized) partial sum for this block of channels; the
        # wrapper sums partials and divides exactly once.
        part = jnp.sum(ssim_map)
        out_ref[...] = jnp.zeros_like(out_ref) + part

    return kernel


def ssim_loss_pallas(img1, img2, window_size=WINDOW_SIZE):
    """Equivalent of SSIMLoss()(img1, img2, window_size, reduction='mean')."""
    N, C, H, W = img1.shape
    NC = N * C
    B = _channels_per_block(NC, W)
    nb = NC // B
    BW = B * W

    # Pack B channels along the lane axis: (N*C, H, W) -> (nb, H, B*W).
    def pack(x):
        x = x.astype(jnp.float32).reshape(nb, B, H, W)
        return jnp.transpose(x, (0, 2, 1, 3)).reshape(nb, H, BW)

    x1 = pack(img1)
    x2 = pack(img2)

    ah_np = _band_matrix(H, window_size, SIGMA)                 # (H, H)
    bw_np = _band_matrix(W, window_size, SIGMA).T               # (W, W)
    bw_blk = np.kron(np.eye(B, dtype=np.float32), bw_np)        # (BW, BW)

    ah = jnp.asarray(ah_np)
    bw = jnp.asarray(bw_blk)

    partials = pl.pallas_call(
        _make_ssim_kernel(),
        out_shape=jax.ShapeDtypeStruct((nb, 8, 128), jnp.float32),
        grid_spec=pltpu.PrefetchScalarGridSpec(
            num_scalar_prefetch=0,
            grid=(nb,),
            in_specs=[
                pl.BlockSpec((1, H, BW), lambda i: (i, 0, 0)),
                pl.BlockSpec((1, H, BW), lambda i: (i, 0, 0)),
                pl.BlockSpec((H, H), lambda i: (0, 0)),       # resident, DMA'd once
                pl.BlockSpec((BW, BW), lambda i: (0, 0)),     # resident, DMA'd once
            ],
            out_specs=pl.BlockSpec((1, 8, 128), lambda i: (i, 0, 0)),
        ),
        compiler_params=pltpu.CompilerParams(
            dimension_semantics=("parallel",)),   # independent per-block partials
    )(x1, x2, ah, bw)

    total_elems = float(N * C * H * W)
    return jnp.sum(partials[:, 0, 0]) / total_elems


def ssim_loss_ref(img1, img2, window_size=WINDOW_SIZE):
    """Pure-JAX reference mirroring the PyTorch module (correctness check)."""
    N, C, H, W = img1.shape
    g = jnp.asarray(_gaussian_1d(window_size, SIGMA))
    w2d = jnp.outer(g, g)
    window = jnp.broadcast_to(w2d[None, None], (C, 1, window_size, window_size))
    pad = window_size // 2

    def conv(x):
        return lax.conv_general_dilated(
            x, window, window_strides=(1, 1),
            padding=((pad, pad), (pad, pad)),
            dimension_numbers=("NCHW", "OIHW", "NCHW"),
            feature_group_count=C,
            precision=lax.Precision.HIGHEST)

    mu1 = conv(img1)
    mu2 = conv(img2)
    mu1_sq = mu1 ** 2
    mu2_sq = mu2 ** 2
    mu1_mu2 = mu1 * mu2
    sigma1_sq = conv(img1 * img1) - mu1_sq
    sigma2_sq = conv(img2 * img2) - mu2_sq
    sigma12 = conv(img1 * img2) - mu1_mu2
    ssim_map = ((2 * mu1_mu2 + C1) * (2 * sigma12 + C2)
                / ((mu1_sq + mu2_sq + C1) * (sigma1_sq + sigma2_sq + C2)))
    return ssim_map.mean()


if __name__ == "__main__":
    key = jax.random.PRNGKey(0)
    k1, k2 = jax.random.split(key)
    img1 = jax.random.uniform(k1, (2, 4, 16, 16), dtype=jnp.float32)
    img2 = jax.random.uniform(k2, (2, 4, 16, 16), dtype=jnp.float32)

    out = jax.block_until_ready(ssim_loss_pallas(img1, img2))
    ref = jax.block_until_ready(ssim_loss_ref(img1, img2))

    assert np.allclose(np.asarray(out), np.asarray(ref), rtol=1e-4, atol=1e-4), (
        f"mismatch: pallas={out} ref={ref}")

    print("KERNEL_OK")
</pallas_src>

<mosaic_0001>
module attributes {stable_mosaic.version = 11 : i64} {
  func.func @kernel(%arg0: i32, %arg1: memref<1x16x128xf32, #tpu.memory_space<vmem>>, %arg2: memref<1x16x128xf32, #tpu.memory_space<vmem>>, %arg3: memref<16x16xf32, #tpu.memory_space<vmem>>, %arg4: memref<128x128xf32, #tpu.memory_space<vmem>>, %arg5: memref<1x8x128xf32, #tpu.memory_space<vmem>>) attributes {dimension_semantics = [#tpu.dimension_semantics<parallel>], iteration_bounds = array<i64: 1>, scalar_prefetch = 0 : i64, scratch_operands = 0 : i64, tpu.core_type = #tpu.core_type<tc>, window_params = [{transform_indices = @transform_0, window_bounds = array<i64: 1, 16, 128>}, {transform_indices = @transform_1, window_bounds = array<i64: 1, 16, 128>}, {pipeline_mode = #tpu.pipeline_mode<synchronous>, transform_indices = @transform_2, window_bounds = array<i64: 16, 16>}, {pipeline_mode = #tpu.pipeline_mode<synchronous>, transform_indices = @transform_3, window_bounds = array<i64: 128, 128>}, {transform_indices = @transform_4, window_bounds = array<i64: 1, 8, 128>}]} {
    %c0 = arith.constant 0 : index
    %c0_0 = arith.constant 0 : index
    %c0_1 = arith.constant 0 : index
    %0 = vector.load %arg1[%c0, %c0_0, %c0_1] : memref<1x16x128xf32, #tpu.memory_space<vmem>>, vector<1x16x128xf32>
    %1 = vector.shape_cast %0 : vector<1x16x128xf32> to vector<16x128xf32>
    %c0_2 = arith.constant 0 : index
    %c0_3 = arith.constant 0 : index
    %c0_4 = arith.constant 0 : index
    %2 = vector.load %arg2[%c0_2, %c0_3, %c0_4] : memref<1x16x128xf32, #tpu.memory_space<vmem>>, vector<1x16x128xf32>
    %3 = vector.shape_cast %2 : vector<1x16x128xf32> to vector<16x128xf32>
    %c0_5 = arith.constant 0 : index
    %c0_6 = arith.constant 0 : index
    %4 = vector.load %arg3[%c0_5, %c0_6] : memref<16x16xf32, #tpu.memory_space<vmem>>, vector<16x16xf32>
    %c0_7 = arith.constant 0 : index
    %c0_8 = arith.constant 0 : index
    %5 = vector.load %arg4[%c0_7, %c0_8] : memref<128x128xf32, #tpu.memory_space<vmem>>, vector<128x128xf32>
    %cst = arith.constant dense<0.000000e+00> : vector<16x128xf32>
    %6 = tpu.matmul %4, %1, %cst {dimension_numbers = #tpu.dot_dimension_numbers<[1], [0], [0], [1], [0, 0, 1, 1], [], []>, precision = #tpu.contract_precision<fp32>} : vector<16x16xf32>, vector<16x128xf32>, vector<16x128xf32> -> vector<16x128xf32>
    %cst_9 = arith.constant dense<0.000000e+00> : vector<16x128xf32>
    %7 = tpu.matmul %6, %5, %cst_9 {dimension_numbers = #tpu.dot_dimension_numbers<[1], [0], [0], [1], [0, 0, 1, 1], [], []>, precision = #tpu.contract_precision<fp32>} : vector<16x128xf32>, vector<128x128xf32>, vector<16x128xf32> -> vector<16x128xf32>
    %cst_10 = arith.constant dense<0.000000e+00> : vector<16x128xf32>
    %8 = tpu.matmul %4, %3, %cst_10 {dimension_numbers = #tpu.dot_dimension_numbers<[1], [0], [0], [1], [0, 0, 1, 1], [], []>, precision = #tpu.contract_precision<fp32>} : vector<16x16xf32>, vector<16x128xf32>, vector<16x128xf32> -> vector<16x128xf32>
    %cst_11 = arith.constant dense<0.000000e+00> : vector<16x128xf32>
    %9 = tpu.matmul %8, %5, %cst_11 {dimension_numbers = #tpu.dot_dimension_numbers<[1], [0], [0], [1], [0, 0, 1, 1], [], []>, precision = #tpu.contract_precision<fp32>} : vector<16x128xf32>, vector<128x128xf32>, vector<16x128xf32> -> vector<16x128xf32>
    %10 = arith.mulf %1, %1 : vector<16x128xf32>
    %cst_12 = arith.constant dense<0.000000e+00> : vector<16x128xf32>
    %11 = tpu.matmul %4, %10, %cst_12 {dimension_numbers = #tpu.dot_dimension_numbers<[1], [0], [0], [1], [0, 0, 1, 1], [], []>, precision = #tpu.contract_precision<fp32>} : vector<16x16xf32>, vector<16x128xf32>, vector<16x128xf32> -> vector<16x128xf32>
    %cst_13 = arith.constant dense<0.000000e+00> : vector<16x128xf32>
    %12 = tpu.matmul %11, %5, %cst_13 {dimension_numbers = #tpu.dot_dimension_numbers<[1], [0], [0], [1], [0, 0, 1, 1], [], []>, precision = #tpu.contract_precision<fp32>} : vector<16x128xf32>, vector<128x128xf32>, vector<16x128xf32> -> vector<16x128xf32>
    %13 = arith.mulf %3, %3 : vector<16x128xf32>
    %cst_14 = arith.constant dense<0.000000e+00> : vector<16x128xf32>
    %14 = tpu.matmul %4, %13, %cst_14 {dimension_numbers = #tpu.dot_dimension_numbers<[1], [0], [0], [1], [0, 0, 1, 1], [], []>, precision = #tpu.contract_precision<fp32>} : vector<16x16xf32>, vector<16x128xf32>, vector<16x128xf32> -> vector<16x128xf32>
    %cst_15 = arith.constant dense<0.000000e+00> : vector<16x128xf32>
    %15 = tpu.matmul %14, %5, %cst_15 {dimension_numbers = #tpu.dot_dimension_numbers<[1], [0], [0], [1], [0, 0, 1, 1], [], []>, precision = #tpu.contract_precision<fp32>} : vector<16x128xf32>, vector<128x128xf32>, vector<16x128xf32> -> vector<16x128xf32>
    %16 = arith.mulf %1, %3 : vector<16x128xf32>
    %cst_16 = arith.constant dense<0.000000e+00> : vector<16x128xf32>
    %17 = tpu.matmul %4, %16, %cst_16 {dimension_numbers = #tpu.dot_dimension_numbers<[1], [0], [0], [1], [0, 0, 1, 1], [], []>, precision = #tpu.contract_precision<fp32>} : vector<16x16xf32>, vector<16x128xf32>, vector<16x128xf32> -> vector<16x128xf32>
    %cst_17 = arith.constant dense<0.000000e+00> : vector<16x128xf32>
    %18 = tpu.matmul %17, %5, %cst_17 {dimension_numbers = #tpu.dot_dimension_numbers<[1], [0], [0], [1], [0, 0, 1, 1], [], []>, precision = #tpu.contract_precision<fp32>} : vector<16x128xf32>, vector<128x128xf32>, vector<16x128xf32> -> vector<16x128xf32>
    %19 = arith.mulf %7, %7 : vector<16x128xf32>
    %20 = arith.mulf %9, %9 : vector<16x128xf32>
    %21 = arith.mulf %7, %9 : vector<16x128xf32>
    %22 = arith.subf %12, %19 : vector<16x128xf32>
    %23 = arith.subf %15, %20 : vector<16x128xf32>
    %24 = arith.subf %18, %21 : vector<16x128xf32>
    %cst_18 = arith.constant 2.000000e+00 : f32
    %25 = vector.broadcast %cst_18 : f32 to vector<16x128xf32>
    %26 = arith.mulf %25, %21 : vector<16x128xf32>
    %cst_19 = arith.constant 9.99999974E-5 : f32
    %27 = vector.broadcast %cst_19 : f32 to vector<16x128xf32>
    %28 = arith.addf %26, %27 : vector<16x128xf32>
    %cst_20 = arith.constant 2.000000e+00 : f32
    %29 = vector.broadcast %cst_20 : f32 to vector<16x128xf32>
    %30 = arith.mulf %29, %24 : vector<16x128xf32>
    %cst_21 = arith.constant 8.99999984E-4 : f32
    %31 = vector.broadcast %cst_21 : f32 to vector<16x128xf32>
    %32 = arith.addf %30, %31 : vector<16x128xf32>
    %33 = arith.mulf %28, %32 : vector<16x128xf32>
    %34 = arith.addf %19, %20 : vector<16x128xf32>
    %cst_22 = arith.constant 9.99999974E-5 : f32
    %35 = vector.broadcast %cst_22 : f32 to vector<16x128xf32>
    %36 = arith.addf %34, %35 : vector<16x128xf32>
    %37 = arith.addf %22, %23 : vector<16x128xf32>
    %cst_23 = arith.constant 8.99999984E-4 : f32
    %38 = vector.broadcast %cst_23 : f32 to vector<16x128xf32>
    %39 = arith.addf %37, %38 : vector<16x128xf32>
    %40 = arith.mulf %36, %39 : vector<16x128xf32>
    %41 = arith.divf %33, %40 : vector<16x128xf32>
    %42 = vector.shape_cast %41 : vector<16x128xf32> to vector<1x16x128xf32>
    %cst_24 = arith.constant dense<0.000000e+00> : vector<1xf32>
    %43 = vector.multi_reduction <add>, %42, %cst_24 [1, 2] : vector<1x16x128xf32> to vector<1xf32>
    %44 = vector.shape_cast %43 : vector<1xf32> to vector<1x1x1xf32>
    %45 = vector.extract %44[0, 0, 0] : f32 from vector<1x1x1xf32>
    %cst_25 = arith.constant 0.000000e+00 : f32
    %46 = vector.broadcast %cst_25 : f32 to vector<1x8x128xf32>
    %47 = vector.broadcast %45 : f32 to vector<1x8x128xf32>
    %48 = arith.addf %46, %47 : vector<1x8x128xf32>
    %c0_26 = arith.constant 0 : index
    %c0_27 = arith.constant 0 : index
    %c0_28 = arith.constant 0 : index
    %49 = vector.load %arg5[%c0_26, %c0_27, %c0_28] : memref<1x8x128xf32, #tpu.memory_space<vmem>>, vector<1x8x128xf32>
    tpu.vector_store %arg5[%c0_26, %c0_27, %c0_28], %48 {strides = array<i32>} : memref<1x8x128xf32, #tpu.memory_space<vmem>>, vector<1x8x128xf32>,
    return
  }
  func.func @transform_0(%arg0: i32) -> (i32, i32, i32) {
    %c0_i32 = arith.constant 0 : i32
    %c0_i32_0 = arith.constant 0 : i32
    %c0_i32_1 = arith.constant 0 : i32
    return %arg0, %c0_i32, %c0_i32_0 : i32, i32, i32
  }
  func.func @transform_1(%arg0: i32) -> (i32, i32, i32) {
    %c0_i32 = arith.constant 0 : i32
    %c0_i32_0 = arith.constant 0 : i32
    %c0_i32_1 = arith.constant 0 : i32
    return %arg0, %c0_i32, %c0_i32_0 : i32, i32, i32
  }
  func.func @transform_2(%arg0: i32) -> (i32, i32) {
    %c0_i32 = arith.constant 0 : i32
    %c0_i32_0 = arith.constant 0 : i32
    %c0_i32_1 = arith.constant 0 : i32
    return %c0_i32, %c0_i32_0 : i32, i32
  }
  func.func @transform_3(%arg0: i32) -> (i32, i32) {
    %c0_i32 = arith.constant 0 : i32
    %c0_i32_0 = arith.constant 0 : i32
    %c0_i32_1 = arith.constant 0 : i32
    return %c0_i32, %c0_i32_0 : i32, i32
  }
  func.func @transform_4(%arg0: i32) -> (i32, i32, i32) {
    %c0_i32 = arith.constant 0 : i32
    %c0_i32_0 = arith.constant 0 : i32
    %c0_i32_1 = arith.constant 0 : i32
    return %arg0, %c0_i32, %c0_i32_0 : i32, i32, i32
  }
}

</mosaic_0001>

<bundles_post_ra>
// kernel: tpu_custom_call.1
= control target key start
LH: loop header
LB: loop body
LE: loop exit
PB: predicated region body
PF: predicated region fallthrough
CT: control target
= control target key end

     0   :  { %9 = vsyncpa [#allocation3], 0  ;;  %s10463_s0 = inlined_call_operand.hbm [shape: f32[1,16,128], index: 0, kind: input, shape index: {}]   ;;  %s10464_s1 = inlined_call_operand.hbm [shape: f32[1,16,128], index: 1, kind: input, shape index: {}]   ;;  %s10465_s2 = inlined_call_operand.hbm [shape: f32[16,16], index: 2, kind: input, shape index: {}]   ;;  %s10466_s3 = inlined_call_operand.hbm [shape: f32[128,128], index: 3, kind: input, shape index: {}]   ;;  %s10467_s4 = inlined_call_operand.hbm [shape: f32[1,8,128], index: 4, kind: output, shape index: {}]  }
   0x1   :  { %10 = vsyncpa [#allocation6], 0 }
   0x2   :  { %11 = vsyncpa [#allocation9], 0 }
   0x3   :  { %12 = vsyncpa [#allocation4], 0  ;;  %s9337_s15 = smov [#allocation5]   ;;  %s9338_s17 = smov [#allocation2]  }
   0x4   :  { %s30_s16 = sshll.u32 %s9337_s15, 4  ;;  %s18_s18 = sshll.u32 %s9338_s17, 4  ;;  %s31_s16 = int_to_ptr.vmem [resolvable:$true] %s30_s16  ;;  %s9369_s18 = int_to_ptr.vmem [resolvable:$true] %s18_s18 }
   0x5   :  { %s9219_s21 = scalar_lea.hbm %s10464_s1, 256 }
   0x6   :  { %p9220_p0 = scmp.ne.s32.totalorder %s10464_s1, %s9219_s21  ;;  %p9223_p1 = scmp.lt.u32.totalorder %s9219_s21, %s10464_s1 }
   0x8   :  { %p9225_p2 = pnand %p9223_p1, %p9220_p0 }
   0xa   :  { %9228 = shalt.err (!%p9225_p2)
}
   0xb   :  { %s9229_s26 = scalar_lea.vmem %s31_s16, 256  ;;  %p9234_p4 = scmp.lt.s32.totalorder %s31_s16, %s31_s16 }
   0xc   :  { %p9230_p3 = scmp.ne.s32.totalorder %s31_s16, %s9229_s26  ;;  %p9235_p5 = scmp.lt.s32.totalorder %s9229_s26, %s9229_s26 }
   0xe   :  { %p9236_p6 = por %p9235_p5, %p9234_p4 }
  0x10   :  { %p9237_p7 = pnand %p9236_p6, %p9230_p3 }
  0x12   :  { %9240 = shalt.err (!%p9237_p7)
}
  0x13   :  { %s9339_s27 = smov 128   ;;  %s9340_s28 = smov 8  }
  0x14   :  { %36 = dma.hbm_to_vmem [thread:$0]  %s10464_s1, 256, %s31_s16, [#allocation6], %s9339_s27, %s9339_s27, %s9340_s28  }
  0x15   :  { %s9241_s7 = scalar_lea.hbm %s10463_s0, 256 }
  0x16   :  { %p9242_p8 = scmp.ne.s32.totalorder %s10463_s0, %s9241_s7  ;;  %p9245_p9 = scmp.lt.u32.totalorder %s9241_s7, %s10463_s0 }
  0x18   :  { %p9247_p10 = pnand %p9245_p9, %p9242_p8 }
  0x1a   :  { %9250 = shalt.err (!%p9247_p10)
}
  0x1b   :  { %s9251_s12 = scalar_lea.vmem %s9369_s18, 256  ;;  %p9256_p12 = scmp.lt.s32.totalorder %s9369_s18, %s9369_s18 }
  0x1c   :  { %p9252_p11 = scmp.ne.s32.totalorder %s9369_s18, %s9251_s12  ;;  %p9257_p13 = scmp.lt.s32.totalorder %s9251_s12, %s9251_s12 }
  0x1e   :  { %p9258_p0 = por %p9257_p13, %p9256_p12 }
  0x20   :  { %p9259_p1 = pnand %p9258_p0, %p9252_p11 }
  0x22   :  { %9262 = shalt.err (!%p9259_p1)
}
  0x23   :  { %24 = dma.hbm_to_vmem [thread:$0]  %s10463_s0, 256, %s9369_s18, [#allocation3], %s9339_s27, %s9339_s27, %s9340_s28  }
  0x24   :  { %s9341_s14 = smov [#allocation7]   ;;  %s9342_s16 = smov [#allocation8]  }
  0x25   :  { %s42_s15 = sshll.u32 %s9341_s14, 4  ;;  %s54_s17 = sshll.u32 %s9342_s16, 4  ;;  %s43_s15 = int_to_ptr.vmem [resolvable:$true] %s42_s15  ;;  %s9406_s17 = int_to_ptr.vmem [resolvable:$true] %s54_s17 }
  0x26   :  { %s9263_s21 = scalar_lea.hbm %s10465_s2, 256 }
  0x27   :  { %p9264_p2 = scmp.ne.s32.totalorder %s10465_s2, %s9263_s21  ;;  %p9267_p3 = scmp.lt.u32.totalorder %s9263_s21, %s10465_s2 }
  0x29   :  { %p9269_p4 = pnand %p9267_p3, %p9264_p2 }
  0x2b   :  { %9272 = shalt.err (!%p9269_p4)
}
  0x2c   :  { %s9273_s0 = scalar_lea.vmem %s43_s15, 256  ;;  %p9278_p6 = scmp.lt.s32.totalorder %s43_s15, %s43_s15 }
  0x2d   :  { %p9274_p5 = scmp.ne.s32.totalorder %s43_s15, %s9273_s0  ;;  %p9279_p7 = scmp.lt.s32.totalorder %s9273_s0, %s9273_s0 }
  0x2f   :  { %p9280_p8 = por %p9279_p7, %p9278_p6 }
  0x31   :  { %p9281_p9 = pnand %p9280_p8, %p9274_p5 }
  0x33   :  { %9284 = shalt.err (!%p9281_p9)
}
  0x34   :  { %48 = dma.hbm_to_vmem [thread:$0]  %s10465_s2, 256, %s43_s15, [#allocation6], %s9339_s27, %s9339_s27, %s9340_s28  }
  0x35   :  { %s9285_s5 = scalar_lea.hbm %s10466_s3, 2048 }
  0x36   :  { %p9286_p10 = scmp.ne.s32.totalorder %s10466_s3, %s9285_s5  ;;  %p9289_p11 = scmp.lt.u32.totalorder %s9285_s5, %s10466_s3 }
  0x38   :  { %p9291_p12 = pnand %p9289_p11, %p9286_p10 }
  0x3a   :  { %9294 = shalt.err (!%p9291_p12)
}
  0x3b   :  { %s9295_s10 = scalar_lea.vmem %s9406_s17, 2048  ;;  %p9300_p0 = scmp.lt.s32.totalorder %s9406_s17, %s9406_s17 }
  0x3c   :  { %p9296_p13 = scmp.ne.s32.totalorder %s9406_s17, %s9295_s10  ;;  %p9301_p1 = scmp.lt.s32.totalorder %s9295_s10, %s9295_s10 }
  0x3e   :  { %p9302_p2 = por %p9301_p1, %p9300_p0 }
  0x40   :  { %p9303_p3 = pnand %p9302_p2, %p9296_p13 }
  0x42   :  { %9306 = shalt.err (!%p9303_p3)
}
  0x43   :  { %60 = dma.hbm_to_vmem [thread:$0]  %s10466_s3, 2048, %s9406_s17, [#allocation9], %s9339_s27, %s9339_s27, %s9340_s28  }
  0x44   :  { %9329 = dma.done.wait [#allocation3], 256  }
  0x45   :  { %9330 = vsyncadd [#allocation3], 4294967040 }
  0x46   :  { %9331 = dma.done.wait [#allocation6], 512  }
  0x47   :  { %9332 = vsyncadd [#allocation6], 4294966784 }
  0x48   :  { %9333 = dma.done.wait [#allocation9], 2048  }
  0x49   :  { %9334 = vsyncadd [#allocation9], 4294965248  ;;  %vm95_vm0 = vcmask 130048   ;;  %v9443_v0 = vld [vmem:[#allocation2] sm:$0xff]  ;;  %v9445_v1 = vld [vmem:[#allocation2 + $0x8] sm:$0xff]  ;;  %s9343_s3 = smov [#allocation10]  }
  0x4a   :  { %v77_v2 = vld [vmem:[#allocation7] sm:$0xff]  ;;  %v103_v3 = vand.u32 4294901760, %v9443_v0  ;;  %v106_v4 = vand.u32 4294901760, %v9445_v1  ;;  %v78_v6 = vld [vmem:[#allocation7 + $0x8] sm:$0xff]  ;;  %v9476_v27 = vld [vmem:[#allocation8] sm:$0xff]  ;;  %s6093_s27 = sshll.u32 %s9343_s3, 4  ;;  %s6094_s27 = int_to_ptr.vmem [resolvable:$true] %s6093_s27 }
  0x4b   :  { %v97_v5 = vsel %vm95_vm0, %v77_v2, 0  ;;  %v100_v8 = vsel %vm95_vm0, %v78_v6, 0  ;;  %v9478_v28 = vld [vmem:[#allocation8 + $0x8] sm:$0xff]  ;;  %v605_v32 = vand.u32 4294901760, %v9476_v27  ;;  %v9495_v35 = vld [vmem:[#allocation8 + $0x10] sm:$0xff]  ;;  %v9497_v36 = vld [vmem:[#allocation8 + $0x18] sm:$0xff]  ;;  %p9312_p5 = scmp.lt.s32.totalorder %s6094_s27, %s6094_s27 }
  0x4c   :  { %v9449_v7 = vand.u32 4294901760, %v97_v5  ;;  %v8024_v9 = vpack.c.bf16 %v106_v4, %v103_v3  ;;  %v9451_v10 = vand.u32 4294901760, %v100_v8  ;;  %v191_v11 = vsub.f32 %v9443_v0, %v103_v3  ;;  %v9504_v39 = vld [vmem:[#allocation8 + $0x20] sm:$0xff]  ;;  %v9506_v40 = vld [vmem:[#allocation8 + $0x28] sm:$0xff]  ;;  %v9519_v44 = vld [vmem:[#allocation8 + $0x30] sm:$0xff]  ;;  %s9307_s12 = scalar_lea.vmem %s6094_s27, 128 }
  0x4d   :  { %v198_v12 = vsub.f32 %v9445_v1, %v106_v4  ;;  %v608_v33 = vand.u32 4294901760, %v9478_v28  ;;  %v611_v37 = vand.u32 4294901760, %v9495_v35  ;;  %v614_v38 = vand.u32 4294901760, %v9497_v36  ;;  %v9521_v45 = vld [vmem:[#allocation8 + $0x38] sm:$0xff]  ;;  %v9535_v49 = vld [vmem:[#allocation8 + $0x40] sm:$0xff]  ;;  %v9537_v50 = vld [vmem:[#allocation8 + $0x48] sm:$0xff]  ;;  %p9308_p4 = scmp.ne.s32.totalorder %s6094_s27, %s9307_s12  ;;  %p9313_p6 = scmp.lt.s32.totalorder %s9307_s12, %s9307_s12 }
  0x4e   :  { %v9456_v13 = vsub.f32 %v97_v5, %v9449_v7  ;;  %8037 = vmatprep.subr.bf16.mxu0 %v8024_v9  ;;  %8025 = vmatprep.subr.bf16.mxu1 %v8024_v9  ;;  %v9459_v14 = vsub.f32 %v100_v8, %v9451_v10  ;;  %v192_v15 = vand.u32 4294901760, %v191_v11  ;;  %v617_v42 = vand.u32 4294901760, %v9504_v39  ;;  %v89_v55 = vld [vmem:[#allocation8 + $0x50] sm:$0xff]  ;;  %v90_v56 = vld [vmem:[#allocation8 + $0x58] sm:$0xff]  ;;  %v91_v60 = vld [vmem:[#allocation8 + $0x60] sm:$0xff] }
  0x4f   :  { %v199_v16 = vand.u32 4294901760, %v198_v12  ;;  %8039 = vmatpush3.bf16.msra.mxu0 %v8024_v9  ;;  %8027 = vmatpush3.bf16.msra.mxu1 %v8024_v9  ;;  %v8032_v31 = vpack.c.bf16 %v198_v12, %v191_v11  ;;  %v9492_v34 = vpack.c.bf16 %v608_v33, %v605_v32  ;;  %v9514_v41 = vpack.c.bf16 %v614_v38, %v611_v37  ;;  %v92_v61 = vld [vmem:[#allocation8 + $0x68] sm:$0xff]  ;;  %v93_v3 = vld [vmem:[#allocation8 + $0x70] sm:$0xff]  ;;  %v94_v4 = vld [vmem:[#allocation8 + $0x78] sm:$0xff]  ;;  %p9314_p7 = por %p9313_p6, %p9312_p5 }
  0x50   :  { %v9462_v17 = vand.u32 4294901760, %v9456_v13  ;;  %v9465_v18 = vand.u32 4294901760, %v9459_v14  ;;  %v193_v19 = vsub.f32 %v191_v11, %v192_v15  ;;  %v10472_v43 = vand.u32 4294901760, %v9506_v40 }
  0x51   :  { %v200_v20 = vsub.f32 %v198_v12, %v199_v16  ;;  %v8040_v21 = vpack.c.bf16 %v199_v16, %v192_v15  ;;  %v10471_v47 = vand.u32 4294901760, %v9519_v44  ;;  %v10470_v48 = vand.u32 4294901760, %v9521_v45  ;;  %p9315_p8 = pnand %p9314_p7, %p9308_p4 }
  0x52   :  { %6789 = vmatprep.mubr.f32.mxu0 %v9462_v17  ;;  %v172_v22 = vsub.f32 %v9456_v13, %v9462_v17  ;;  %v182_v23 = vsub.f32 %v9459_v14, %v9465_v18  ;;  %v194_v24 = vand.u32 4294901760, %v193_v19  ;;  %v9529_v46 = vpack.c.bf16 %v10472_v43, %v617_v42 }
  0x53   :  { %6790 = vmatmul.mubr.f32.vlgmr.msra.gmra.mrb[0].mxu0 %v9465_v18  ;;  %v201_v25 = vand.u32 4294901760, %v200_v20  ;;  %8041 = vmatprep.subr.bf16.mxu0 %v8040_v21  ;;  %v9545_v51 = vpack.c.bf16 %v10470_v48, %v10471_v47  ;;  %v10469_v52 = vand.u32 4294901760, %v9535_v49  ;;  %v10468_v53 = vand.u32 4294901760, %v9537_v50 }
  0x54   :  { %v9473_v26 = vand.u32 4294901760, %v172_v22  ;;  %8043 = vmatpush3.bf16.msra.mxu0 %v8040_v21  ;;  %6796 = vmatprep.mubr.f32.mxu0 %v9449_v7  ;;  %v9480_v29 = vand.u32 4294901760, %v182_v23  ;;  %v635_v57 = vand.u32 4294901760, %v89_v55  ;;  %v638_v58 = vand.u32 4294901760, %v90_v56 }
  0x55   :  { %v8028_v30 = vpack.c.bf16 %v201_v25, %v194_v24  ;;  %8045 = vmatprep.subr.bf16.mxu0 %v8024_v9  ;;  %v9557_v54 = vpack.c.bf16 %v10468_v53, %v10469_v52  ;;  %v641_v62 = vand.u32 4294901760, %v91_v60  ;;  %v644_v63 = vand.u32 4294901760, %v92_v61 }
  0x56   :  { %6768 = vmatprep.mubr.f32.mxu1 %v9473_v26  ;;  %v9567_v59 = vpack.c.bf16 %v638_v58, %v635_v57  ;;  %v647_v5 = vand.u32 4294901760, %v93_v3  ;;  %v650_v6 = vand.u32 4294901760, %v94_v4  ;;  %v714_v11 = vsub.f32 %v9478_v28, %v608_v33 }
  0x57   :  { %6769 = vmatmul.mubr.f32.vlgmr.msra.gmra.mrb[0].mxu1 %v9480_v29  ;;  %8029 = vmatprep.subr.bf16.mxu1 %v8028_v30  ;;  %v9573_v2 = vpack.c.bf16 %v644_v63, %v641_v62  ;;  %v777_v24 = vsub.f32 %v89_v55, %v635_v57  ;;  %v784_v25 = vsub.f32 %v90_v56, %v638_v58 }
  0x58   :  { %8031 = vmatpush3.bf16.msra.mxu1 %v8028_v30  ;;  %6775 = vmatprep.mubr.f32.mxu1 %v9449_v7  ;;  %v9579_v8 = vpack.c.bf16 %v650_v6, %v647_v5  ;;  %v715_v15 = vand.u32 4294901760, %v714_v11  ;;  %v791_v33 = vsub.f32 %v91_v60, %v641_v62  ;;  %v798_v53 = vsub.f32 %v92_v61, %v644_v63 }
  0x59   :  { %8033 = vmatprep.subr.bf16.mxu1 %v8032_v31  ;;  %v785_v28 = vand.u32 4294901760, %v784_v25 }
  0x5a   :  { %v716_v20 = vsub.f32 %v714_v11, %v715_v15  ;;  %v792_v52 = vand.u32 4294901760, %v791_v33  ;;  %v799_v48 = vand.u32 4294901760, %v798_v53 }
  0x5b   :  { %6797 = vmatmul.mubr.f32.vlgmr.msra.gmra.mrb[0].mxu0 %v9451_v10 }
  0x5c   :  { %8047 = vmatpush3.bf16.msra.mxu0 %v8024_v9  ;;  %6803 = vmatprep.mubr.f32.mxu0 %v9449_v7  ;;  %v707_v9 = vsub.f32 %v9476_v27, %v605_v32  ;;  %v717_v22 = vand.u32 4294901760, %v716_v20  ;;  %v778_v27 = vand.u32 4294901760, %v777_v24  ;;  %v786_v32 = vsub.f32 %v784_v25, %v785_v28 }
  0x5d   :  { %8049 = vmatprep.subr.bf16.mxu0 %v9492_v34  ;;  %v793_v20 = vsub.f32 %v791_v33, %v792_v52  ;;  %v9601_v47 = vpack.c.bf16 %v799_v48, %v792_v52  ;;  %v800_v55 = vsub.f32 %v798_v53, %v799_v48  ;;  %v9613_v52 = vpack.c.bf16 %v798_v53, %v791_v33 }
  0x5e   :  { %v708_v12 = vand.u32 4294901760, %v707_v9  ;;  %v9597_v30 = vpack.c.bf16 %v785_v28, %v778_v27 }
  0x5f   :  { %6776 = vmatmul.mubr.f32.vlgmr.msra.gmra.mrb[0].mxu1 %v9451_v10  ;;  %10485 = vst [vmem:[#allocation16_spill] sm:$0xff] %v9601_v47  ;;  %v794_v56 = vand.u32 4294901760, %v793_v20  ;;  %v801_v43 = vand.u32 4294901760, %v800_v55  ;;  %v10489_v55 = vand.u32 4294901760, %v9521_v45 }
  0x60   :  { %8035 = vmatpush3.bf16.msra.mxu1 %v8032_v31  ;;  %6782 = vmatprep.mubr.f32.mxu1 %v9456_v13  ;;  %v9591_v16 = vpack.c.bf16 %v715_v15, %v708_v12  ;;  %v709_v19 = vsub.f32 %v707_v9, %v708_v12  ;;  %10484 = vst [vmem:[#allocation15_spill] sm:$0xff] %v9597_v30  ;;  %v787_v15 = vand.u32 4294901760, %v786_v32 }
  0x61   :  { %8145 = vmatprep.subr.bf16.mxu1 %v9492_v34  ;;  %v779_v31 = vsub.f32 %v777_v24, %v778_v27  ;;  %v9605_v62 = vpack.c.bf16 %v801_v43, %v794_v56  ;;  %v9609_v32 = vpack.c.bf16 %v714_v11, %v707_v9  ;;  %v9625_v43 = vsub.f32 %v9497_v36, %v614_v38 }
  0x62   :  { %v710_v21 = vand.u32 4294901760, %v709_v19  ;;  %v9658_v56 = vsub.f32 %v9521_v45, %v10489_v55 }
  0x63   :  { %6804 = vmatmul.mubr.f32.vlgmr.msra.gmra.mrb[0].mxu0 %v9451_v10  ;;  %v780_v12 = vand.u32 4294901760, %v779_v31  ;;  %v729_v11 = vand.u32 4294901760, %v9625_v43 }
  0x64   :  { %8051 = vmatpush3.bf16.msra.mxu0 %v9492_v34  ;;  %v9594_v23 = vpack.c.bf16 %v717_v22, %v710_v21  ;;  %v805_v21 = vsub.f32 %v93_v3, %v647_v5  ;;  %v812_v22 = vsub.f32 %v94_v4, %v650_v6  ;;  %v9611_v3 = vpack.c.bf16 %v784_v25, %v777_v24 }
  0x65   :  { %8053 = vmatprep.subr.bf16.mxu0 %v9514_v41  ;;  %v9599_v19 = vpack.c.bf16 %v787_v15, %v780_v12  ;;  %v9620_v4 = vsub.f32 %v9495_v35, %v611_v37  ;;  %v9632_v24 = vsub.f32 %v9504_v39, %v617_v42  ;;  %v10487_v35 = vand.u32 4294901760, %v9506_v40 }
  0x66   :  { %v806_v57 = vand.u32 4294901760, %v805_v21  ;;  %v813_v58 = vand.u32 4294901760, %v812_v22  ;;  %v9615_v48 = vpack.c.bf16 %v812_v22, %v805_v21  ;;  %v730_v15 = vsub.f32 %v9625_v43, %v729_v11 }
  0x67   :  { %6783 = vmatmul.mubr.f32.vlgmr.msra.gmra.mrb[0].mxu1 %v9459_v14  ;;  %v722_v9 = vand.u32 4294901760, %v9620_v4  ;;  %v9637_v37 = vsub.f32 %v9506_v40, %v10487_v35  ;;  %v10488_v42 = vand.u32 4294901760, %v9519_v44  ;;  %v10490_v35 = vand.u32 4294901760, %v9535_v49 }
  0x68   :  { %8147 = vmatpush3.bf16.msra.mxu1 %v9492_v34  ;;  %8055 = vmatpush3.bf16.msra.mxu0 %v9514_v41  ;;  %v9603_v27 = vpack.c.bf16 %v813_v58, %v806_v57  ;;  %v807_v60 = vsub.f32 %v805_v21, %v806_v57  ;;  %v814_v61 = vsub.f32 %v812_v22, %v813_v58  ;;  %v736_v21 = vand.u32 4294901760, %v9632_v24 }
  0x69   :  { %8149 = vmatprep.subr.bf16.mxu1 %v9514_v41  ;;  %8057 = vmatprep.subr.bf16.mxu0 %v9529_v46  ;;  %v723_v12 = vsub.f32 %v9620_v4, %v722_v9  ;;  %v743_v39 = vand.u32 4294901760, %v9637_v37  ;;  %v9650_v40 = vsub.f32 %v9519_v44, %v10488_v42 }
  0x6a   :  { %10486 = vst [vmem:[#allocation17_spill] sm:$0xff] %v9603_v27  ;;  %v808_v63 = vand.u32 4294901760, %v807_v60  ;;  %v815_v28 = vand.u32 4294901760, %v814_v61  ;;  %v9664_v60 = vpack.c.bf16 %v729_v11, %v722_v9  ;;  %v10491_v9 = vand.u32 4294901760, %v9537_v50 }
  0x6b   :  { %v724_v61 = vand.u32 4294901760, %v723_v12 }
  0x6c   :  { %8151 = vmatpush3.bf16.msra.mxu1 %v9514_v41  ;;  %8059 = vmatpush3.bf16.msra.mxu0 %v9529_v46  ;;  %v9607_v31 = vpack.c.bf16 %v815_v28, %v808_v63  ;;  %v731_v63 = vand.u32 4294901760, %v730_v15  ;;  %v737_v28 = vsub.f32 %v9632_v24, %v736_v21  ;;  %v9680_v11 = vsub.f32 %v9537_v50, %v10491_v9 }
  0x6d   :  { %8153 = vmatprep.subr.bf16.mxu1 %v9529_v46  ;;  %8061 = vmatprep.subr.bf16.mxu0 %v9545_v51 }
  0x6e   :  { %v738_v15 = vand.u32 4294901760, %v737_v28 }
  0x70   :  { %8155 = vmatpush3.bf16.msra.mxu1 %v9529_v46  ;;  %8063 = vmatpush3.bf16.msra.mxu0 %v9545_v51 }
  0x71   :  { %8157 = vmatprep.subr.bf16.mxu1 %v9545_v51  ;;  %8065 = vmatprep.subr.bf16.mxu0 %v9557_v54 }
  0x74   :  { %8159 = vmatpush3.bf16.msra.mxu1 %v9545_v51  ;;  %8067 = vmatpush3.bf16.msra.mxu0 %v9557_v54 }
  0x75   :  { %8161 = vmatprep.subr.bf16.mxu1 %v9557_v54  ;;  %8069 = vmatprep.subr.bf16.mxu0 %v9567_v59 }
  0x78   :  { %8163 = vmatpush3.bf16.msra.mxu1 %v9557_v54  ;;  %8071 = vmatpush3.bf16.msra.mxu0 %v9567_v59 }
  0x79   :  { %8165 = vmatprep.subr.bf16.mxu1 %v9567_v59  ;;  %8073 = vmatprep.subr.bf16.mxu0 %v9573_v2 }
  0x7c   :  { %8167 = vmatpush3.bf16.msra.mxu1 %v9567_v59  ;;  %8075 = vmatpush3.bf16.msra.mxu0 %v9573_v2 }
  0x7d   :  { %8169 = vmatprep.subr.bf16.mxu1 %v9573_v2  ;;  %8077 = vmatprep.subr.bf16.mxu0 %v9579_v8 }
  0x80   :  { %8171 = vmatpush3.bf16.msra.mxu1 %v9573_v2  ;;  %8079 = vmatpush3.bf16.msra.mxu0 %v9579_v8 }
  0x81   :  { %8173 = vmatprep.subr.bf16.mxu1 %v9579_v8  ;;  %8081 = vmatprep.subr.bf16.mxu0 %v9594_v23 }
  0x84   :  { %8175 = vmatpush3.bf16.msra.mxu1 %v9579_v8 }
  0x85   :  { %8177 = vmatprep.subr.bf16.mxu1 %v9591_v16 }
 0x136   :  { %v6805_v5 = vpop.f32.mrb[0].mxu0 }
 0x137   :  { %v594_v6 = vpop.f32.mrb[1].mxu0 }
 0x13a   :  { %v6784_v53 = vpop.f32.mrb[0].mxu1 }
 0x13b   :  { %v9104_v25 = vadd.f32 %v6805_v5, %v6784_v53  ;;  %v348_v36 = vpop.f32.mrb[1].mxu1  ;;  %v744_v5 = vsub.f32 %v9637_v37, %v743_v39  ;;  %v757_v53 = vand.u32 4294901760, %v9658_v56 }
 0x13c   :  { %v9105_v38 = vadd.f32 %v594_v6, %v348_v36  ;;  %v750_v6 = vand.u32 4294901760, %v9650_v40 }
 0x13d   :  { %v9639_v33 = vand.u32 4294901760, %v9104_v25  ;;  %v745_v42 = vand.u32 4294901760, %v744_v5  ;;  %v758_v50 = vsub.f32 %v9658_v56, %v757_v53 }
 0x13e   :  { %v9643_v20 = vand.u32 4294901760, %v9105_v38 }
 0x13f   :  { %v9653_v22 = vsub.f32 %v9104_v25, %v9639_v33  ;;  %v9675_v25 = vsub.f32 %v9535_v49, %v10490_v35  ;;  %v751_v49 = vsub.f32 %v9650_v40, %v750_v6  ;;  %v759_v5 = vand.u32 4294901760, %v758_v50 }
 0x140   :  { %v9661_v57 = vsub.f32 %v9105_v38, %v9643_v20  ;;  %v9683_v38 = vpack.c.bf16 %v731_v63, %v724_v61  ;;  %v9692_v61 = vpack.c.bf16 %v743_v39, %v736_v21  ;;  %v9696_v63 = vpack.c.bf16 %v745_v42, %v738_v15  ;;  %v9767_v15 = vld [vmem:[#allocation5] sm:$0xff] }
 0x141   :  { %v697_v58 = vand.u32 4294901760, %v9653_v22  ;;  %v764_v35 = vand.u32 4294901760, %v9675_v25  ;;  %v752_v28 = vand.u32 4294901760, %v751_v49  ;;  %10492 = vst [vmem:[#allocation18_spill] sm:$0xff] %v9767_v15 }
 0x142   :  { %v687_v44 = vand.u32 4294901760, %v9661_v57 }
 0x143   :  { %v698_v45 = vsub.f32 %v9653_v22, %v697_v58  ;;  %v9709_v39 = vpack.c.bf16 %v759_v5, %v752_v28 }
 0x144   :  { %6943 = vmatprep.mubr.f32.mxu1 %v687_v44  ;;  %v688_v36 = vsub.f32 %v9661_v57, %v687_v44  ;;  %v9698_v44 = vpack.c.bf16 %v757_v53, %v750_v6 }
 0x145   :  { %6944 = vmatmul.mubr.f32.vlgmr.msra.gmra.mrb[2].mxu1 %v697_v58  ;;  %v699_v55 = vand.u32 4294901760, %v698_v45  ;;  %v771_v58 = vand.u32 4294901760, %v9680_v11  ;;  %v765_v45 = vsub.f32 %v9675_v25, %v764_v35 }
 0x146   :  { %8179 = vmatpush3.bf16.msra.mxu1 %v9591_v16  ;;  %6978 = vmatprep.mubr.f32.mxu1 %v9643_v20  ;;  %v689_v12 = vand.u32 4294901760, %v688_v36 }
 0x147   :  { %8181 = vmatprep.subr.bf16.mxu1 %v9664_v60  ;;  %v772_v21 = vsub.f32 %v9680_v11, %v771_v58  ;;  %v9711_v6 = vpack.c.bf16 %v771_v58, %v764_v35  ;;  %v766_v53 = vand.u32 4294901760, %v765_v45 }
 0x148   :  { %6838 = vmatprep.mubr.f32.mxu0 %v689_v12  ;;  %v9742_v12 = vpack.c.bf16 %v9625_v43, %v9620_v4  ;;  %v2474_v4 = vmul.f32 %v9443_v0, %v9443_v0  ;;  %v2475_v43 = vmul.f32 %v9445_v1, %v9445_v1  ;;  %v9769_v0 = vld [vmem:[#allocation5 + $0x8] sm:$0xff]  ;;  %v9776_v1 = vpack.c.bf16 %v9680_v11, %v9675_v25 }
 0x149   :  { %6839 = vmatmul.mubr.f32.vlgmr.msra.gmra.mrb[2].mxu0 %v699_v55  ;;  %v773_v9 = vand.u32 4294901760, %v772_v21  ;;  %10493 = vst [vmem:[#allocation19_spill] sm:$0xff] %v9769_v0 }
 0x14a   :  { %8083 = vmatpush3.bf16.msra.mxu0 %v9594_v23  ;;  %8183 = vmatpush3.bf16.msra.mxu1 %v9664_v60 }
 0x14b   :  { %6873 = vmatprep.mubr.f32.mxu0 %v9643_v20  ;;  %8085 = vmatprep.subr.bf16.mxu0 %v9683_v38  ;;  %v9717_v36 = vpack.c.bf16 %v773_v9, %v766_v53 }
 0x14c   :  { %8185 = vmatprep.subr.bf16.mxu1 %v9692_v61 }
 0x14e   :  { %8087 = vmatpush3.bf16.msra.mxu0 %v9683_v38  ;;  %8187 = vmatpush3.bf16.msra.mxu1 %v9692_v61 }
 0x14f   :  { %8089 = vmatprep.subr.bf16.mxu0 %v9696_v63  ;;  %8189 = vmatprep.subr.bf16.mxu1 %v9698_v44 }
 0x152   :  { %8091 = vmatpush3.bf16.msra.mxu0 %v9696_v63  ;;  %8191 = vmatpush3.bf16.msra.mxu1 %v9698_v44 }
 0x153   :  { %8093 = vmatprep.subr.bf16.mxu0 %v9709_v39  ;;  %8193 = vmatprep.subr.bf16.mxu1 %v9711_v6 }
 0x156   :  { %8095 = vmatpush3.bf16.msra.mxu0 %v9709_v39  ;;  %8195 = vmatpush3.bf16.msra.mxu1 %v9711_v6 }
 0x157   :  { %8097 = vmatprep.subr.bf16.mxu0 %v9717_v36  ;;  %8197 = vmatprep.subr.bf16.mxu1 %v9597_v30 }
 0x15a   :  { %8099 = vmatpush3.bf16.msra.mxu0 %v9717_v36  ;;  %8199 = vmatpush3.bf16.msra.mxu1 %v9597_v30 }
 0x15b   :  { %8101 = vmatprep.subr.bf16.mxu0 %v9599_v19  ;;  %8201 = vmatprep.subr.bf16.mxu1 %v9601_v47 }
 0x15e   :  { %8103 = vmatpush3.bf16.msra.mxu0 %v9599_v19  ;;  %8203 = vmatpush3.bf16.msra.mxu1 %v9601_v47 }
 0x15f   :  { %8105 = vmatprep.subr.bf16.mxu0 %v9605_v62  ;;  %8205 = vmatprep.subr.bf16.mxu1 %v9603_v27 }
 0x162   :  { %8107 = vmatpush3.bf16.msra.mxu0 %v9605_v62  ;;  %8207 = vmatpush3.bf16.msra.mxu1 %v9603_v27 }
 0x163   :  { %8109 = vmatprep.subr.bf16.mxu0 %v9607_v31  ;;  %8209 = vmatprep.subr.bf16.mxu1 %v9492_v34 }
 0x165   :  { %6979 = vmatmul.mubr.f32.vlgmr.msra.gmra.mrb[2].mxu1 %v9639_v33 }
 0x166   :  { %8111 = vmatpush3.bf16.msra.mxu0 %v9607_v31  ;;  %8211 = vmatpush3.bf16.msra.mxu1 %v9492_v34 }
 0x167   :  { %7013 = vmatprep.mubr.f32.mxu1 %v9643_v20  ;;  %8113 = vmatprep.subr.bf16.mxu0 %v9609_v32  ;;  %v9752_v20 = vpack.c.bf16 %v9637_v37, %v9632_v24  ;;  %v2477_v24 = vand.u32 4294901760, %v2474_v4  ;;  %v2480_v37 = vand.u32 4294901760, %v2475_v43 }
 0x168   :  { %8213 = vmatprep.subr.bf16.mxu1 %v9514_v41 }
 0x169   :  { %6874 = vmatmul.mubr.f32.vlgmr.msra.gmra.mrb[2].mxu0 %v9639_v33  ;;  %v9781_v42 = vsub.f32 %v2474_v4, %v2477_v24  ;;  %v9783_v49 = vsub.f32 %v2475_v43, %v2480_v37  ;;  %v8456_v53 = vpack.c.bf16 %v2480_v37, %v2477_v24 }
 0x16a   :  { %8115 = vmatpush3.bf16.msra.mxu0 %v9609_v32  ;;  %6908 = vmatprep.mubr.f32.mxu0 %v9661_v57  ;;  %v9764_v57 = vpack.c.bf16 %v9658_v56, %v9650_v40  ;;  %v1289_v40 = vand.u32 4294901760, %v9767_v15  ;;  %v1292_v56 = vand.u32 4294901760, %v9769_v0 }
 0x16b   :  { %8215 = vmatpush3.bf16.msra.mxu1 %v9514_v41  ;;  %8117 = vmatprep.subr.bf16.mxu0 %v9742_v12  ;;  %v2566_v11 = vand.u32 4294901760, %v9781_v42  ;;  %v2573_v50 = vand.u32 4294901760, %v9783_v49  ;;  %v8464_v37 = vpack.c.bf16 %v9783_v49, %v9781_v42 }
 0x16c   :  { %8217 = vmatprep.subr.bf16.mxu1 %v9529_v46  ;;  %v9789_v55 = vsub.f32 %v9767_v15, %v1289_v40  ;;  %v9792_v25 = vsub.f32 %v9769_v0, %v1292_v56  ;;  %v8240_v15 = vpack.c.bf16 %v1292_v56, %v1289_v40 }
 0x16d   :  { %v2567_v28 = vsub.f32 %v9781_v42, %v2566_v11  ;;  %v2574_v5 = vsub.f32 %v9783_v49, %v2573_v50 }
 0x16e   :  { %8119 = vmatpush3.bf16.msra.mxu0 %v9742_v12  ;;  %v1378_v35 = vand.u32 4294901760, %v9789_v55  ;;  %v1385_v58 = vand.u32 4294901760, %v9792_v25 }
 0x16f   :  { %8219 = vmatpush3.bf16.msra.mxu1 %v9529_v46  ;;  %8121 = vmatprep.subr.bf16.mxu0 %v9752_v20  ;;  %v2568_v9 = vand.u32 4294901760, %v2567_v28  ;;  %v2575_v4 = vand.u32 4294901760, %v2574_v5 }
 0x170   :  { %8221 = vmatprep.subr.bf16.mxu1 %v9545_v51  ;;  %v1379_v45 = vsub.f32 %v9789_v55, %v1378_v35  ;;  %v1386_v21 = vsub.f32 %v9792_v25, %v1385_v58 }
 0x171   :  { %v8460_v27 = vpack.c.bf16 %v2575_v4, %v2568_v9 }
 0x172   :  { %8123 = vmatpush3.bf16.msra.mxu0 %v9752_v20  ;;  %v1380_v43 = vand.u32 4294901760, %v1379_v45  ;;  %v1387_v0 = vand.u32 4294901760, %v1386_v21 }
 0x173   :  { %8223 = vmatpush3.bf16.msra.mxu1 %v9545_v51  ;;  %8125 = vmatprep.subr.bf16.mxu0 %v9764_v57 }
 0x174   :  { %8225 = vmatprep.subr.bf16.mxu1 %v9557_v54  ;;  %v8244_v24 = vpack.c.bf16 %v1387_v0, %v1380_v43 }
 0x176   :  { %8127 = vmatpush3.bf16.msra.mxu0 %v9764_v57 }
 0x177   :  { %8227 = vmatpush3.bf16.msra.mxu1 %v9557_v54  ;;  %8129 = vmatprep.subr.bf16.mxu0 %v9776_v1 }
 0x178   :  { %8229 = vmatprep.subr.bf16.mxu1 %v9567_v59 }
 0x17a   :  { %8131 = vmatpush3.bf16.msra.mxu0 %v9776_v1 }
 0x17b   :  { %8231 = vmatpush3.bf16.msra.mxu1 %v9567_v59  ;;  %8133 = vmatprep.subr.bf16.mxu0 %v9611_v3 }
 0x17c   :  { %8233 = vmatprep.subr.bf16.mxu1 %v9573_v2 }
 0x17e   :  { %8135 = vmatpush3.bf16.msra.mxu0 %v9611_v3 }
 0x17f   :  { %8235 = vmatpush3.bf16.msra.mxu1 %v9573_v2  ;;  %8137 = vmatprep.subr.bf16.mxu0 %v9613_v52 }
 0x180   :  { %8237 = vmatprep.subr.bf16.mxu1 %v9579_v8 }
 0x182   :  { %8139 = vmatpush3.bf16.msra.mxu0 %v9613_v52 }
 0x183   :  { %8239 = vmatpush3.bf16.msra.mxu1 %v9579_v8  ;;  %8141 = vmatprep.subr.bf16.mxu0 %v9615_v48 }
 0x184   :  { %8457 = vmatprep.subr.bf16.mxu1 %v8456_v53 }
 0x186   :  { %7014 = vmatmul.mubr.f32.vlgmr.msra.gmra.mrb[2].mxu1 %v9639_v33  ;;  %8143 = vmatpush3.bf16.msra.mxu0 %v9615_v48  ;;  %v8248_v33 = vpack.c.bf16 %v9792_v25, %v9789_v55 }
 0x187   :  { %8459 = vmatpush3.bf16.msra.mxu1 %v8456_v53  ;;  %7272 = vmatprep.mubr.f32.mxu1 %v9473_v26 }
 0x188   :  { %8241 = vmatprep.subr.bf16.mxu0 %v8240_v15  ;;  %8461 = vmatprep.subr.bf16.mxu1 %v8460_v27 }
 0x189   :  { %6909 = vmatmul.mubr.f32.vlgmr.msra.gmra.mrb[2].mxu0 %v9653_v22  ;;  %v8256_v22 = vpack.c.bf16 %v1385_v58, %v1378_v35 }
 0x18a   :  { %7273 = vmatmul.mubr.f32.vlgmr.msra.gmra.mrb[4].mxu1 %v9480_v29  ;;  %8243 = vmatpush3.bf16.msra.mxu0 %v8240_v15 }
 0x18b   :  { %7020 = vmatprep.mubr.f32.mxu0 %v9473_v26  ;;  %8245 = vmatprep.subr.bf16.mxu0 %v8244_v24 }
 0x18c   :  { %8463 = vmatpush3.bf16.msra.mxu1 %v8460_v27  ;;  %7279 = vmatprep.mubr.f32.mxu1 %v9449_v7  ;;  %v8472_v27 = vpack.c.bf16 %v2573_v50, %v2566_v11 }
 0x18d   :  { %7021 = vmatmul.mubr.f32.vlgmr.msra.gmra.mrb[4].mxu0 %v9480_v29  ;;  %8465 = vmatprep.subr.bf16.mxu1 %v8464_v37 }
 0x18e   :  { %8247 = vmatpush3.bf16.msra.mxu0 %v8244_v24  ;;  %7027 = vmatprep.mubr.f32.mxu0 %v9449_v7 }
 0x18f   :  { %8249 = vmatprep.subr.bf16.mxu0 %v8248_v33 }
 0x192   :  { %7280 = vmatmul.mubr.f32.vlgmr.msra.gmra.mrb[4].mxu1 %v9451_v10 }
 0x193   :  { %8467 = vmatpush3.bf16.msra.mxu1 %v8464_v37  ;;  %7286 = vmatprep.mubr.f32.mxu1 %v9456_v13 }
 0x194   :  { %8469 = vmatprep.subr.bf16.mxu1 %v8456_v53 }
 0x195   :  { %7028 = vmatmul.mubr.f32.vlgmr.msra.gmra.mrb[4].mxu0 %v9451_v10 }
 0x196   :  { %8251 = vmatpush3.bf16.msra.mxu0 %v8248_v33  ;;  %7034 = vmatprep.mubr.f32.mxu0 %v9456_v13 }
 0x197   :  { %8253 = vmatprep.subr.bf16.mxu0 %v8240_v15 }
 0x19a   :  { %7287 = vmatmul.mubr.f32.vlgmr.msra.gmra.mrb[4].mxu1 %v9459_v14 }
 0x19b   :  { %8471 = vmatpush3.bf16.msra.mxu1 %v8456_v53  ;;  %7293 = vmatprep.mubr.f32.mxu1 %v9462_v17 }
 0x19c   :  { %8473 = vmatprep.subr.bf16.mxu1 %v8472_v27 }
 0x19d   :  { %7035 = vmatmul.mubr.f32.vlgmr.msra.gmra.mrb[4].mxu0 %v9459_v14 }
 0x19e   :  { %8255 = vmatpush3.bf16.msra.mxu0 %v8240_v15  ;;  %7041 = vmatprep.mubr.f32.mxu0 %v9462_v17 }
 0x19f   :  { %8257 = vmatprep.subr.bf16.mxu0 %v8256_v22 }
 0x1a2   :  { %7294 = vmatmul.mubr.f32.vlgmr.msra.gmra.mrb[4].mxu1 %v9465_v18 }
 0x1a3   :  { %8475 = vmatpush3.bf16.msra.mxu1 %v8472_v27  ;;  %7300 = vmatprep.mubr.f32.mxu1 %v9449_v7 }
 0x1a4   :  { %8477 = vmatprep.subr.bf16.mxu1 %v8456_v53 }
 0x1a5   :  { %7042 = vmatmul.mubr.f32.vlgmr.msra.gmra.mrb[4].mxu0 %v9465_v18 }
 0x1a6   :  { %8259 = vmatpush3.bf16.msra.mxu0 %v8256_v22  ;;  %7048 = vmatprep.mubr.f32.mxu0 %v9449_v7 }
 0x1a7   :  { %8261 = vmatprep.subr.bf16.mxu0 %v8240_v15 }
 0x1aa   :  { %7301 = vmatmul.mubr.f32.vlgmr.msra.gmra.mrb[4].mxu1 %v9451_v10 }
 0x1ab   :  { %8479 = vmatpush3.bf16.msra.mxu1 %v8456_v53  ;;  %7307 = vmatprep.mubr.f32.mxu1 %v9449_v7 }
 0x1ac   :  { %8481 = vmatprep.subr.bf16.mxu1 %v9492_v34 }
 0x1ad   :  { %7049 = vmatmul.mubr.f32.vlgmr.msra.gmra.mrb[4].mxu0 %v9451_v10 }
 0x1ae   :  { %8263 = vmatpush3.bf16.msra.mxu0 %v8240_v15  ;;  %7055 = vmatprep.mubr.f32.mxu0 %v9449_v7 }
 0x1af   :  { %8265 = vmatprep.subr.bf16.mxu0 %v9492_v34 }
 0x1b2   :  { %7308 = vmatmul.mubr.f32.vlgmr.msra.gmra.mrb[4].mxu1 %v9451_v10 }
 0x1b3   :  { %8483 = vmatpush3.bf16.msra.mxu1 %v9492_v34 }
 0x1b4   :  { %8485 = vmatprep.subr.bf16.mxu1 %v9514_v41 }
 0x1b5   :  { %7056 = vmatmul.mubr.f32.vlgmr.msra.gmra.mrb[4].mxu0 %v9451_v10 }
 0x1b6   :  { %8267 = vmatpush3.bf16.msra.mxu0 %v9492_v34 }
 0x1b7   :  { %8487 = vmatpush3.bf16.msra.mxu1 %v9514_v41  ;;  %8269 = vmatprep.subr.bf16.mxu0 %v9514_v41 }
 0x1b8   :  { %8489 = vmatprep.subr.bf16.mxu1 %v9529_v46 }
 0x1ba   :  { %8271 = vmatpush3.bf16.msra.mxu0 %v9514_v41 }
 0x1bb   :  { %8491 = vmatpush3.bf16.msra.mxu1 %v9529_v46  ;;  %8273 = vmatprep.subr.bf16.mxu0 %v9529_v46 }
 0x1bc   :  { %8493 = vmatprep.subr.bf16.mxu1 %v9545_v51 }
 0x1be   :  { %8275 = vmatpush3.bf16.msra.mxu0 %v9529_v46 }
 0x1bf   :  { %8495 = vmatpush3.bf16.msra.mxu1 %v9545_v51  ;;  %8277 = vmatprep.subr.bf16.mxu0 %v9545_v51 }
 0x1c0   :  { %8497 = vmatprep.subr.bf16.mxu1 %v9557_v54 }
 0x1c2   :  { %8279 = vmatpush3.bf16.msra.mxu0 %v9545_v51 }
 0x1c3   :  { %8499 = vmatpush3.bf16.msra.mxu1 %v9557_v54  ;;  %8281 = vmatprep.subr.bf16.mxu0 %v9557_v54 }
 0x1c4   :  { %8501 = vmatprep.subr.bf16.mxu1 %v9567_v59 }
 0x1c6   :  { %8283 = vmatpush3.bf16.msra.mxu0 %v9557_v54 }
 0x1c7   :  { %8503 = vmatpush3.bf16.msra.mxu1 %v9567_v59  ;;  %8285 = vmatprep.subr.bf16.mxu0 %v9567_v59 }
 0x1c8   :  { %8505 = vmatprep.subr.bf16.mxu1 %v9573_v2 }
 0x1ca   :  { %8287 = vmatpush3.bf16.msra.mxu0 %v9567_v59 }
 0x1cb   :  { %8507 = vmatpush3.bf16.msra.mxu1 %v9573_v2  ;;  %8289 = vmatprep.subr.bf16.mxu0 %v9573_v2 }
 0x1cc   :  { %8509 = vmatprep.subr.bf16.mxu1 %v9579_v8 }
 0x1ce   :  { %8291 = vmatpush3.bf16.msra.mxu0 %v9573_v2 }
 0x1cf   :  { %8511 = vmatpush3.bf16.msra.mxu1 %v9579_v8  ;;  %8293 = vmatprep.subr.bf16.mxu0 %v9579_v8 }
 0x1d0   :  { %8513 = vmatprep.subr.bf16.mxu1 %v9594_v23 }
 0x1d2   :  { %8295 = vmatpush3.bf16.msra.mxu0 %v9579_v8 }
 0x1d3   :  { %8297 = vmatprep.subr.bf16.mxu0 %v9594_v23 }
 0x259   :  { %v7015_v15 = vpop.f32.mrb[2].mxu1 }
 0x25a   :  { %v1278_v0 = vpop.f32.mrb[3].mxu1 }
 0x25c   :  { %v6910_v40 = vpop.f32.mrb[2].mxu0 }
 0x25d   :  { %v9879_v56 = vadd.f32 %v7015_v15, %v6910_v40  ;;  %v962_v42 = vpop.f32.mrb[3].mxu0 }
 0x25e   :  { %v9881_v49 = vadd.f32 %v1278_v0, %v962_v42 }
 0x285   :  { %v7309_v55 = vpop.f32.mrb[4].mxu1 }
 0x286   :  { %v9883_v25 = vand.u32 4294901760, %v7309_v55  ;;  %v2968_v11 = vpop.f32.mrb[5].mxu1 }
 0x287   :  { %v9885_v50 = vand.u32 4294901760, %v2968_v11 }
 0x288   :  { %v9888_v35 = vsub.f32 %v7309_v55, %v9883_v25  ;;  %v7057_v58 = vpop.f32.mrb[4].mxu0 }
 0x289   :  { %v9891_v28 = vsub.f32 %v2968_v11, %v9885_v50  ;;  %v9893_v5 = vand.u32 4294901760, %v7057_v58  ;;  %v1780_v45 = vpop.f32.mrb[5].mxu0  ;;  %v10494_v11 = vld [vmem:[#allocation17_spill] sm:$0xff] }
 0x28a   :  { %v3071_v21 = vand.u32 4294901760, %v9888_v35  ;;  %v9896_v53 = vand.u32 4294901760, %v1780_v45 }
 0x28b   :  { %v3061_v9 = vand.u32 4294901760, %v9891_v28  ;;  %v9900_v4 = vsub.f32 %v7057_v58, %v9893_v5  ;;  %v10495_v58 = vld [vmem:[#allocation18_spill] sm:$0xff] }
 0x28c   :  { %v3072_v43 = vsub.f32 %v9888_v35, %v3071_v21  ;;  %v9906_v24 = vsub.f32 %v1780_v45, %v9896_v53  ;;  %v10496_v45 = vld [vmem:[#allocation19_spill] sm:$0xff] }
 0x28d   :  { %v1883_v37 = vand.u32 4294901760, %v9900_v4  ;;  %v3062_v33 = vsub.f32 %v9891_v28, %v3061_v9 }
 0x28e   :  { %v1873_v27 = vand.u32 4294901760, %v9906_v24  ;;  %v3073_v0 = vand.u32 4294901760, %v3072_v43 }
 0x28f   :  { %v1884_v22 = vsub.f32 %v9900_v4, %v1883_v37  ;;  %v3063_v15 = vand.u32 4294901760, %v3062_v33 }
 0x290   :  { %v1874_v40 = vsub.f32 %v9906_v24, %v1873_v27 }
 0x291   :  { %7342 = vmatprep.mubr.f32.mxu1 %v3063_v15  ;;  %v1885_v55 = vand.u32 4294901760, %v1884_v22 }
 0x292   :  { %7343 = vmatmul.mubr.f32.vlgmr.msra.gmra.mrb[6].mxu1 %v3073_v0  ;;  %v1875_v42 = vand.u32 4294901760, %v1874_v40 }
 0x293   :  { %8515 = vmatpush3.bf16.msra.mxu1 %v9594_v23  ;;  %7377 = vmatprep.mubr.f32.mxu1 %v9885_v50 }
 0x294   :  { %7090 = vmatprep.mubr.f32.mxu0 %v1875_v42  ;;  %8517 = vmatprep.subr.bf16.mxu1 %v9683_v38 }
 0x295   :  { %7091 = vmatmul.mubr.f32.vlgmr.msra.gmra.mrb[6].mxu0 %v1885_v55 }
 0x296   :  { %8299 = vmatpush3.bf16.msra.mxu0 %v9594_v23  ;;  %7125 = vmatprep.mubr.f32.mxu0 %v9896_v53 }
 0x297   :  { %8519 = vmatpush3.bf16.msra.mxu1 %v9683_v38  ;;  %8301 = vmatprep.subr.bf16.mxu0 %v9683_v38 }
 0x298   :  { %8521 = vmatprep.subr.bf16.mxu1 %v9696_v63 }
 0x29a   :  { %8303 = vmatpush3.bf16.msra.mxu0 %v9683_v38 }
 0x29b   :  { %8523 = vmatpush3.bf16.msra.mxu1 %v9696_v63  ;;  %8305 = vmatprep.subr.bf16.mxu0 %v9696_v63 }
 0x29c   :  { %8525 = vmatprep.subr.bf16.mxu1 %v9709_v39 }
 0x29e   :  { %8307 = vmatpush3.bf16.msra.mxu0 %v9696_v63 }
 0x29f   :  { %8527 = vmatpush3.bf16.msra.mxu1 %v9709_v39  ;;  %8309 = vmatprep.subr.bf16.mxu0 %v9709_v39 }
 0x2a0   :  { %8529 = vmatprep.subr.bf16.mxu1 %v9717_v36 }
 0x2a2   :  { %8311 = vmatpush3.bf16.msra.mxu0 %v9709_v39 }
 0x2a3   :  { %8531 = vmatpush3.bf16.msra.mxu1 %v9717_v36  ;;  %8313 = vmatprep.subr.bf16.mxu0 %v9717_v36 }
 0x2a4   :  { %8533 = vmatprep.subr.bf16.mxu1 %v9599_v19 }
 0x2a6   :  { %8315 = vmatpush3.bf16.msra.mxu0 %v9717_v36 }
 0x2a7   :  { %8535 = vmatpush3.bf16.msra.mxu1 %v9599_v19  ;;  %8317 = vmatprep.subr.bf16.mxu0 %v9599_v19 }
 0x2a8   :  { %8537 = vmatprep.subr.bf16.mxu1 %v9605_v62 }
 0x2aa   :  { %8319 = vmatpush3.bf16.msra.mxu0 %v9599_v19 }
 0x2ab   :  { %8539 = vmatpush3.bf16.msra.mxu1 %v9605_v62  ;;  %8321 = vmatprep.subr.bf16.mxu0 %v9605_v62 }
 0x2ac   :  { %8541 = vmatprep.subr.bf16.mxu1 %v9607_v31 }
 0x2ae   :  { %8323 = vmatpush3.bf16.msra.mxu0 %v9605_v62 }
 0x2af   :  { %8543 = vmatpush3.bf16.msra.mxu1 %v9607_v31  ;;  %8325 = vmatprep.subr.bf16.mxu0 %v9607_v31 }
 0x2b0   :  { %8545 = vmatprep.subr.bf16.mxu1 %v9609_v32 }
 0x2b2   :  { %7378 = vmatmul.mubr.f32.vlgmr.msra.gmra.mrb[6].mxu1 %v9883_v25  ;;  %8327 = vmatpush3.bf16.msra.mxu0 %v9607_v31 }
 0x2b3   :  { %8547 = vmatpush3.bf16.msra.mxu1 %v9609_v32  ;;  %7412 = vmatprep.mubr.f32.mxu1 %v9891_v28 }
 0x2b4   :  { %8329 = vmatprep.subr.bf16.mxu0 %v9609_v32  ;;  %8549 = vmatprep.subr.bf16.mxu1 %v9742_v12 }
 0x2b5   :  { %7126 = vmatmul.mubr.f32.vlgmr.msra.gmra.mrb[6].mxu0 %v9893_v5 }
 0x2b6   :  { %8331 = vmatpush3.bf16.msra.mxu0 %v9609_v32  ;;  %7160 = vmatprep.mubr.f32.mxu0 %v9906_v24 }
 0x2b7   :  { %8551 = vmatpush3.bf16.msra.mxu1 %v9742_v12  ;;  %8333 = vmatprep.subr.bf16.mxu0 %v9742_v12 }
 0x2b8   :  { %8553 = vmatprep.subr.bf16.mxu1 %v9752_v20 }
 0x2ba   :  { %8335 = vmatpush3.bf16.msra.mxu0 %v9742_v12 }
 0x2bb   :  { %8555 = vmatpush3.bf16.msra.mxu1 %v9752_v20  ;;  %8337 = vmatprep.subr.bf16.mxu0 %v9752_v20 }
 0x2bc   :  { %8557 = vmatprep.subr.bf16.mxu1 %v9764_v57 }
 0x2be   :  { %8339 = vmatpush3.bf16.msra.mxu0 %v9752_v20 }
 0x2bf   :  { %8559 = vmatpush3.bf16.msra.mxu1 %v9764_v57  ;;  %8341 = vmatprep.subr.bf16.mxu0 %v9764_v57 }
 0x2c0   :  { %8561 = vmatprep.subr.bf16.mxu1 %v9776_v1 }
 0x2c2   :  { %8343 = vmatpush3.bf16.msra.mxu0 %v9764_v57 }
 0x2c3   :  { %8563 = vmatpush3.bf16.msra.mxu1 %v9776_v1  ;;  %8345 = vmatprep.subr.bf16.mxu0 %v9776_v1 }
 0x2c4   :  { %8565 = vmatprep.subr.bf16.mxu1 %v9611_v3 }
 0x2c6   :  { %8347 = vmatpush3.bf16.msra.mxu0 %v9776_v1 }
 0x2c7   :  { %8567 = vmatpush3.bf16.msra.mxu1 %v9611_v3  ;;  %8349 = vmatprep.subr.bf16.mxu0 %v9611_v3 }
 0x2c8   :  { %8569 = vmatprep.subr.bf16.mxu1 %v9613_v52 }
 0x2ca   :  { %8351 = vmatpush3.bf16.msra.mxu0 %v9611_v3 }
 0x2cb   :  { %8571 = vmatpush3.bf16.msra.mxu1 %v9613_v52  ;;  %8353 = vmatprep.subr.bf16.mxu0 %v9613_v52 }
 0x2cc   :  { %8573 = vmatprep.subr.bf16.mxu1 %v9615_v48 }
 0x2ce   :  { %8355 = vmatpush3.bf16.msra.mxu0 %v9613_v52 }
 0x2cf   :  { %8575 = vmatpush3.bf16.msra.mxu1 %v9615_v48  ;;  %8357 = vmatprep.subr.bf16.mxu0 %v9615_v48 }
 0x2d0   :  { %8577 = vmatprep.subr.bf16.mxu1 %v9492_v34 }
 0x2d2   :  { %7413 = vmatmul.mubr.f32.vlgmr.msra.gmra.mrb[6].mxu1 %v9888_v35  ;;  %8359 = vmatpush3.bf16.msra.mxu0 %v9615_v48  ;;  %v9217_v35 = vld [vmem:[#allocation2] sm:$0xff] }
 0x2d3   :  { %8579 = vmatpush3.bf16.msra.mxu1 %v9492_v34  ;;  %7447 = vmatprep.mubr.f32.mxu1 %v3061_v9  ;;  %v4850_v28 = vmul.f32 %v9217_v35, %v10495_v58  ;;  %v3663_v9 = vmul.f32 %v10496_v45, %v10496_v45 }
 0x2d4   :  { %8361 = vmatprep.subr.bf16.mxu0 %v9492_v34  ;;  %8581 = vmatprep.subr.bf16.mxu1 %v9514_v41 }
 0x2d5   :  { %7161 = vmatmul.mubr.f32.vlgmr.msra.gmra.mrb[6].mxu0 %v9900_v4  ;;  %v4853_v4 = vand.u32 4294901760, %v4850_v28 }
 0x2d6   :  { %8363 = vmatpush3.bf16.msra.mxu0 %v9492_v34  ;;  %7195 = vmatprep.mubr.f32.mxu0 %v1873_v27 }
 0x2d7   :  { %8583 = vmatpush3.bf16.msra.mxu1 %v9514_v41  ;;  %8365 = vmatprep.subr.bf16.mxu0 %v9514_v41  ;;  %v10089_v33 = vsub.f32 %v4850_v28, %v4853_v4 }
 0x2d8   :  { %8585 = vmatprep.subr.bf16.mxu1 %v9529_v46 }
 0x2d9   :  { %v4942_v0 = vand.u32 4294901760, %v10089_v33 }
 0x2da   :  { %8367 = vmatpush3.bf16.msra.mxu0 %v9514_v41 }
 0x2db   :  { %8587 = vmatpush3.bf16.msra.mxu1 %v9529_v46  ;;  %8369 = vmatprep.subr.bf16.mxu0 %v9529_v46  ;;  %v4943_v35 = vsub.f32 %v10089_v33, %v4942_v0 }
 0x2dc   :  { %8589 = vmatprep.subr.bf16.mxu1 %v9545_v51 }
 0x2de   :  { %8371 = vmatpush3.bf16.msra.mxu0 %v9529_v46 }
 0x2df   :  { %8591 = vmatpush3.bf16.msra.mxu1 %v9545_v51  ;;  %8373 = vmatprep.subr.bf16.mxu0 %v9545_v51 }
 0x2e0   :  { %8593 = vmatprep.subr.bf16.mxu1 %v9557_v54 }
 0x2e2   :  { %8375 = vmatpush3.bf16.msra.mxu0 %v9545_v51 }
 0x2e3   :  { %8595 = vmatpush3.bf16.msra.mxu1 %v9557_v54  ;;  %8377 = vmatprep.subr.bf16.mxu0 %v9557_v54 }
 0x2e4   :  { %8597 = vmatprep.subr.bf16.mxu1 %v9567_v59 }
 0x2e6   :  { %8379 = vmatpush3.bf16.msra.mxu0 %v9557_v54 }
 0x2e7   :  { %8599 = vmatpush3.bf16.msra.mxu1 %v9567_v59  ;;  %8381 = vmatprep.subr.bf16.mxu0 %v9567_v59 }
 0x2e8   :  { %8601 = vmatprep.subr.bf16.mxu1 %v9573_v2 }
 0x2ea   :  { %8383 = vmatpush3.bf16.msra.mxu0 %v9567_v59 }
 0x2eb   :  { %8603 = vmatpush3.bf16.msra.mxu1 %v9573_v2  ;;  %8385 = vmatprep.subr.bf16.mxu0 %v9573_v2 }
 0x2ec   :  { %8605 = vmatprep.subr.bf16.mxu1 %v9579_v8 }
 0x2ee   :  { %8387 = vmatpush3.bf16.msra.mxu0 %v9573_v2 }
 0x2ef   :  { %8607 = vmatpush3.bf16.msra.mxu1 %v9579_v8  ;;  %8389 = vmatprep.subr.bf16.mxu0 %v9579_v8 }
 0x2f0   :  { %8609 = vmatprep.subr.bf16.mxu1 %v9591_v16 }
 0x2f2   :  { %7448 = vmatmul.mubr.f32.vlgmr.msra.gmra.mrb[6].mxu1 %v3071_v21  ;;  %8391 = vmatpush3.bf16.msra.mxu0 %v9579_v8 }
 0x2f3   :  { %8611 = vmatpush3.bf16.msra.mxu1 %v9591_v16  ;;  %7482 = vmatprep.mubr.f32.mxu1 %v9885_v50 }
 0x2f4   :  { %8393 = vmatprep.subr.bf16.mxu0 %v9591_v16  ;;  %8613 = vmatprep.subr.bf16.mxu1 %v9664_v60 }
 0x2f5   :  { %7196 = vmatmul.mubr.f32.vlgmr.msra.gmra.mrb[6].mxu0 %v1883_v37  ;;  %v3668_v37 = vand.u32 4294901760, %v3663_v9 }
 0x2f6   :  { %8395 = vmatpush3.bf16.msra.mxu0 %v9591_v16  ;;  %7230 = vmatprep.mubr.f32.mxu0 %v9896_v53 }
 0x2f7   :  { %8615 = vmatpush3.bf16.msra.mxu1 %v9664_v60  ;;  %8397 = vmatprep.subr.bf16.mxu0 %v9664_v60  ;;  %v10098_v15 = vsub.f32 %v3663_v9, %v3668_v37 }
 0x2f8   :  { %8617 = vmatprep.subr.bf16.mxu1 %v9692_v61 }
 0x2f9   :  { %v3761_v55 = vand.u32 4294901760, %v10098_v15 }
 0x2fa   :  { %8399 = vmatpush3.bf16.msra.mxu0 %v9664_v60 }
 0x2fb   :  { %8619 = vmatpush3.bf16.msra.mxu1 %v9692_v61  ;;  %8401 = vmatprep.subr.bf16.mxu0 %v9692_v61 }
 0x2fc   :  { %8621 = vmatprep.subr.bf16.mxu1 %v9698_v44 }
 0x2fe   :  { %8403 = vmatpush3.bf16.msra.mxu0 %v9692_v61 }
 0x2ff   :  { %8623 = vmatpush3.bf16.msra.mxu1 %v9698_v44  ;;  %8405 = vmatprep.subr.bf16.mxu0 %v9698_v44 }
 0x300   :  { %8625 = vmatprep.subr.bf16.mxu1 %v9711_v6 }
 0x302   :  { %8407 = vmatpush3.bf16.msra.mxu0 %v9698_v44 }
 0x303   :  { %8627 = vmatpush3.bf16.msra.mxu1 %v9711_v6  ;;  %8409 = vmatprep.subr.bf16.mxu0 %v9711_v6 }
 0x304   :  { %8629 = vmatprep.subr.bf16.mxu1 %v9597_v30 }
 0x306   :  { %8411 = vmatpush3.bf16.msra.mxu0 %v9711_v6 }
 0x307   :  { %8631 = vmatpush3.bf16.msra.mxu1 %v9597_v30  ;;  %8413 = vmatprep.subr.bf16.mxu0 %v9597_v30 }
 0x308   :  { %8633 = vmatprep.subr.bf16.mxu1 %v9601_v47 }
 0x30a   :  { %8415 = vmatpush3.bf16.msra.mxu0 %v9597_v30 }
 0x30b   :  { %8635 = vmatpush3.bf16.msra.mxu1 %v9601_v47  ;;  %8417 = vmatprep.subr.bf16.mxu0 %v9601_v47 }
 0x30c   :  { %8637 = vmatprep.subr.bf16.mxu1 %v10494_v11 }
 0x30e   :  { %8419 = vmatpush3.bf16.msra.mxu0 %v9601_v47 }
 0x30f   :  { %8639 = vmatpush3.bf16.msra.mxu1 %v10494_v11  ;;  %8421 = vmatprep.subr.bf16.mxu0 %v10494_v11 }
 0x310   :  { %8641 = vmatprep.subr.bf16.mxu1 %v9492_v34 }
 0x312   :  { %7483 = vmatmul.mubr.f32.vlgmr.msra.gmra.mrb[6].mxu1 %v9883_v25  ;;  %8423 = vmatpush3.bf16.msra.mxu0 %v10494_v11 }
 0x313   :  { %8643 = vmatpush3.bf16.msra.mxu1 %v9492_v34  ;;  %7517 = vmatprep.mubr.f32.mxu1 %v9885_v50  ;;  %v9218_v50 = vld [vmem:[#allocation2 + $0x8] sm:$0xff] }
 0x314   :  { %8425 = vmatprep.subr.bf16.mxu0 %v9492_v34  ;;  %8645 = vmatprep.subr.bf16.mxu1 %v9514_v41  ;;  %v4851_v21 = vmul.f32 %v9218_v50, %v10496_v45  ;;  %v3762_v50 = vsub.f32 %v10098_v15, %v3761_v55 }
 0x315   :  { %7231 = vmatmul.mubr.f32.vlgmr.msra.gmra.mrb[6].mxu0 %v9893_v5 }
 0x316   :  { %8427 = vmatpush3.bf16.msra.mxu0 %v9492_v34  ;;  %7265 = vmatprep.mubr.f32.mxu0 %v9896_v53  ;;  %v3662_v53 = vmul.f32 %v10495_v58, %v10495_v58  ;;  %v4856_v43 = vand.u32 4294901760, %v4851_v21  ;;  %v3763_v11 = vand.u32 4294901760, %v3762_v50 }
 0x317   :  { %8647 = vmatpush3.bf16.msra.mxu1 %v9514_v41  ;;  %8429 = vmatprep.subr.bf16.mxu0 %v9514_v41 }
 0x318   :  { %8649 = vmatprep.subr.bf16.mxu1 %v9529_v46  ;;  %v3665_v24 = vand.u32 4294901760, %v3662_v53  ;;  %v10091_v27 = vsub.f32 %v4851_v21, %v4856_v43  ;;  %v8888_v45 = vpack.c.bf16 %v4856_v43, %v4853_v4  ;;  %v4944_v21 = vand.u32 4294901760, %v4943_v35 }
 0x31a   :  { %8431 = vmatpush3.bf16.msra.mxu0 %v9514_v41  ;;  %v10096_v22 = vsub.f32 %v3662_v53, %v3665_v24  ;;  %v4949_v40 = vand.u32 4294901760, %v10091_v27  ;;  %v8672_v47 = vpack.c.bf16 %v3668_v37, %v3665_v24  ;;  %v8896_v43 = vpack.c.bf16 %v10091_v27, %v10089_v33 }
 0x31b   :  { %8651 = vmatpush3.bf16.msra.mxu1 %v9529_v46  ;;  %8433 = vmatprep.subr.bf16.mxu0 %v9529_v46 }
 0x31c   :  { %8653 = vmatprep.subr.bf16.mxu1 %v9545_v51  ;;  %v3754_v42 = vand.u32 4294901760, %v10096_v22  ;;  %v4950_v58 = vsub.f32 %v10091_v27, %v4949_v40 }
 0x31e   :  { %8435 = vmatpush3.bf16.msra.mxu0 %v9529_v46  ;;  %v3755_v28 = vsub.f32 %v10096_v22, %v3754_v42  ;;  %v4951_v53 = vand.u32 4294901760, %v4950_v58 }
 0x31f   :  { %8655 = vmatpush3.bf16.msra.mxu1 %v9545_v51  ;;  %8437 = vmatprep.subr.bf16.mxu0 %v9545_v51 }
 0x320   :  { %8657 = vmatprep.subr.bf16.mxu1 %v9557_v54  ;;  %v3756_v9 = vand.u32 4294901760, %v3755_v28  ;;  %v8892_v30 = vpack.c.bf16 %v4951_v53, %v4944_v21 }
 0x322   :  { %8439 = vmatpush3.bf16.msra.mxu0 %v9545_v51  ;;  %v8676_v4 = vpack.c.bf16 %v3763_v11, %v3756_v9 }
 0x323   :  { %8659 = vmatpush3.bf16.msra.mxu1 %v9557_v54  ;;  %8441 = vmatprep.subr.bf16.mxu0 %v9557_v54 }
 0x324   :  { %8661 = vmatprep.subr.bf16.mxu1 %v9567_v59 }
 0x326   :  { %8443 = vmatpush3.bf16.msra.mxu0 %v9557_v54 }
 0x327   :  { %8663 = vmatpush3.bf16.msra.mxu1 %v9567_v59  ;;  %8445 = vmatprep.subr.bf16.mxu0 %v9567_v59 }
 0x328   :  { %8665 = vmatprep.subr.bf16.mxu1 %v9573_v2 }
 0x32a   :  { %8447 = vmatpush3.bf16.msra.mxu0 %v9567_v59 }
 0x32b   :  { %8667 = vmatpush3.bf16.msra.mxu1 %v9573_v2  ;;  %8449 = vmatprep.subr.bf16.mxu0 %v9573_v2 }
 0x32c   :  { %8669 = vmatprep.subr.bf16.mxu1 %v9579_v8 }
 0x32e   :  { %8451 = vmatpush3.bf16.msra.mxu0 %v9573_v2 }
 0x32f   :  { %8671 = vmatpush3.bf16.msra.mxu1 %v9579_v8  ;;  %8453 = vmatprep.subr.bf16.mxu0 %v9579_v8 }
 0x330   :  { %8889 = vmatprep.subr.bf16.mxu1 %v8888_v45 }
 0x332   :  { %7518 = vmatmul.mubr.f32.vlgmr.msra.gmra.mrb[6].mxu1 %v9883_v25  ;;  %8455 = vmatpush3.bf16.msra.mxu0 %v9579_v8  ;;  %v8680_v25 = vpack.c.bf16 %v10098_v15, %v10096_v22 }
 0x333   :  { %8891 = vmatpush3.bf16.msra.mxu1 %v8888_v45  ;;  %7776 = vmatprep.mubr.f32.mxu1 %v9473_v26 }
 0x334   :  { %8673 = vmatprep.subr.bf16.mxu0 %v8672_v47  ;;  %8893 = vmatprep.subr.bf16.mxu1 %v8892_v30 }
 0x335   :  { %7266 = vmatmul.mubr.f32.vlgmr.msra.gmra.mrb[6].mxu0 %v9893_v5 }
 0x336   :  { %7777 = vmatmul.mubr.f32.vlgmr.msra.gmra.mrb[8].mxu1 %v9480_v29  ;;  %8675 = vmatpush3.bf16.msra.mxu0 %v8672_v47 }
 0x337   :  { %7524 = vmatprep.mubr.f32.mxu0 %v9473_v26  ;;  %8677 = vmatprep.subr.bf16.mxu0 %v8676_v4  ;;  %v8904_v26 = vpack.c.bf16 %v4949_v40, %v4942_v0 }
 0x338   :  { %8895 = vmatpush3.bf16.msra.mxu1 %v8892_v30  ;;  %7783 = vmatprep.mubr.f32.mxu1 %v9449_v7 }
 0x339   :  { %7525 = vmatmul.mubr.f32.vlgmr.msra.gmra.mrb[8].mxu0 %v9480_v29  ;;  %8897 = vmatprep.subr.bf16.mxu1 %v8896_v43  ;;  %v8688_v29 = vpack.c.bf16 %v3761_v55, %v3754_v42 }
 0x33a   :  { %8679 = vmatpush3.bf16.msra.mxu0 %v8676_v4  ;;  %7531 = vmatprep.mubr.f32.mxu0 %v9449_v7 }
 0x33b   :  { %8681 = vmatprep.subr.bf16.mxu0 %v8680_v25 }
 0x33e   :  { %7784 = vmatmul.mubr.f32.vlgmr.msra.gmra.mrb[8].mxu1 %v9451_v10 }
 0x33f   :  { %8899 = vmatpush3.bf16.msra.mxu1 %v8896_v43  ;;  %7790 = vmatprep.mubr.f32.mxu1 %v9456_v13 }
 0x340   :  { %8901 = vmatprep.subr.bf16.mxu1 %v8888_v45 }
 0x341   :  { %7532 = vmatmul.mubr.f32.vlgmr.msra.gmra.mrb[8].mxu0 %v9451_v10 }
 0x342   :  { %8683 = vmatpush3.bf16.msra.mxu0 %v8680_v25  ;;  %7538 = vmatprep.mubr.f32.mxu0 %v9456_v13  ;;  %v10193_v13 = vmul.f32 %v9881_v49, %v9881_v49 }
 0x343   :  { %8685 = vmatprep.subr.bf16.mxu0 %v8672_v47 }
 0x346   :  { %7791 = vmatmul.mubr.f32.vlgmr.msra.gmra.mrb[8].mxu1 %v9459_v14 }
 0x347   :  { %8903 = vmatpush3.bf16.msra.mxu1 %v8888_v45  ;;  %7797 = vmatprep.mubr.f32.mxu1 %v9462_v17 }
 0x348   :  { %8905 = vmatprep.subr.bf16.mxu1 %v8904_v26 }
 0x349   :  { %7539 = vmatmul.mubr.f32.vlgmr.msra.gmra.mrb[8].mxu0 %v9459_v14 }
 0x34a   :  { %8687 = vmatpush3.bf16.msra.mxu0 %v8672_v47  ;;  %7545 = vmatprep.mubr.f32.mxu0 %v9462_v17 }
 0x34b   :  { %8689 = vmatprep.subr.bf16.mxu0 %v8688_v29 }
 0x34e   :  { %7798 = vmatmul.mubr.f32.vlgmr.msra.gmra.mrb[8].mxu1 %v9465_v18 }
 0x34f   :  { %8907 = vmatpush3.bf16.msra.mxu1 %v8904_v26  ;;  %7804 = vmatprep.mubr.f32.mxu1 %v9449_v7 }
 0x350   :  { %8909 = vmatprep.subr.bf16.mxu1 %v8888_v45 }
 0x351   :  { %7546 = vmatmul.mubr.f32.vlgmr.msra.gmra.mrb[8].mxu0 %v9465_v18 }
 0x352   :  { %8691 = vmatpush3.bf16.msra.mxu0 %v8688_v29  ;;  %7552 = vmatprep.mubr.f32.mxu0 %v9449_v7 }
 0x353   :  { %8693 = vmatprep.subr.bf16.mxu0 %v8672_v47 }
 0x356   :  { %7805 = vmatmul.mubr.f32.vlgmr.msra.gmra.mrb[8].mxu1 %v9451_v10 }
 0x357   :  { %8911 = vmatpush3.bf16.msra.mxu1 %v8888_v45  ;;  %7811 = vmatprep.mubr.f32.mxu1 %v9449_v7 }
 0x358   :  { %8913 = vmatprep.subr.bf16.mxu1 %v9492_v34 }
 0x359   :  { %7553 = vmatmul.mubr.f32.vlgmr.msra.gmra.mrb[8].mxu0 %v9451_v10 }
 0x35a   :  { %8695 = vmatpush3.bf16.msra.mxu0 %v8672_v47  ;;  %7559 = vmatprep.mubr.f32.mxu0 %v9449_v7  ;;  %v10187_v7 = vmul.f32 %v9879_v56, %v9879_v56 }
 0x35b   :  { %8697 = vmatprep.subr.bf16.mxu0 %v9492_v34 }
 0x35e   :  { %7812 = vmatmul.mubr.f32.vlgmr.msra.gmra.mrb[8].mxu1 %v9451_v10 }
 0x35f   :  { %8915 = vmatpush3.bf16.msra.mxu1 %v9492_v34 }
 0x360   :  { %8917 = vmatprep.subr.bf16.mxu1 %v9514_v41 }
 0x361   :  { %7560 = vmatmul.mubr.f32.vlgmr.msra.gmra.mrb[8].mxu0 %v9451_v10 }
 0x362   :  { %8699 = vmatpush3.bf16.msra.mxu0 %v9492_v34 }
 0x363   :  { %8919 = vmatpush3.bf16.msra.mxu1 %v9514_v41  ;;  %8701 = vmatprep.subr.bf16.mxu0 %v9514_v41 }
 0x364   :  { %8921 = vmatprep.subr.bf16.mxu1 %v9529_v46 }
 0x366   :  { %8703 = vmatpush3.bf16.msra.mxu0 %v9514_v41 }
 0x367   :  { %8923 = vmatpush3.bf16.msra.mxu1 %v9529_v46  ;;  %8705 = vmatprep.subr.bf16.mxu0 %v9529_v46 }
 0x368   :  { %8925 = vmatprep.subr.bf16.mxu1 %v9545_v51 }
 0x36a   :  { %8707 = vmatpush3.bf16.msra.mxu0 %v9529_v46 }
 0x36b   :  { %8927 = vmatpush3.bf16.msra.mxu1 %v9545_v51  ;;  %8709 = vmatprep.subr.bf16.mxu0 %v9545_v51 }
 0x36c   :  { %8929 = vmatprep.subr.bf16.mxu1 %v9557_v54 }
 0x36e   :  { %8711 = vmatpush3.bf16.msra.mxu0 %v9545_v51 }
 0x36f   :  { %8931 = vmatpush3.bf16.msra.mxu1 %v9557_v54  ;;  %8713 = vmatprep.subr.bf16.mxu0 %v9557_v54 }
 0x370   :  { %8933 = vmatprep.subr.bf16.mxu1 %v9567_v59 }
 0x372   :  { %8715 = vmatpush3.bf16.msra.mxu0 %v9557_v54 }
 0x373   :  { %8935 = vmatpush3.bf16.msra.mxu1 %v9567_v59  ;;  %8717 = vmatprep.subr.bf16.mxu0 %v9567_v59 }
 0x374   :  { %8937 = vmatprep.subr.bf16.mxu1 %v9573_v2 }
 0x376   :  { %8719 = vmatpush3.bf16.msra.mxu0 %v9567_v59 }
 0x377   :  { %8939 = vmatpush3.bf16.msra.mxu1 %v9573_v2  ;;  %8721 = vmatprep.subr.bf16.mxu0 %v9573_v2 }
 0x378   :  { %8941 = vmatprep.subr.bf16.mxu1 %v9579_v8 }
 0x37a   :  { %8723 = vmatpush3.bf16.msra.mxu0 %v9573_v2 }
 0x37b   :  { %8943 = vmatpush3.bf16.msra.mxu1 %v9579_v8  ;;  %8725 = vmatprep.subr.bf16.mxu0 %v9579_v8 }
 0x37c   :  { %8945 = vmatprep.subr.bf16.mxu1 %v9594_v23 }
 0x37e   :  { %8727 = vmatpush3.bf16.msra.mxu0 %v9579_v8 }
 0x37f   :  { %8729 = vmatprep.subr.bf16.mxu0 %v9594_v23 }
 0x405   :  { %v10189_v10 = vpop.f32.mrb[6].mxu1 }
 0x406   :  { %v6045_v14 = vsub.f32 %v10189_v10, %v10187_v7  ;;  %v10197_v17 = vpop.f32.mrb[7].mxu1 }
 0x407   :  { %v6044_v18 = vsub.f32 %v10197_v17, %v10193_v13 }
 0x408   :  { %v7267_v47 = vpop.f32.mrb[6].mxu0 }
 0x409   :  { %v10201_v30 = vmul.f32 %v7267_v47, %v7267_v47  ;;  %v10204_v5 = vmul.f32 %v9879_v56, %v7267_v47  ;;  %v2464_v11 = vpop.f32.mrb[7].mxu0 }
 0x40a   :  { %v10206_v24 = vmul.f32 %v2464_v11, %v2464_v11  ;;  %v10209_v37 = vmul.f32 %v9881_v49, %v2464_v11 }
 0x40b   :  { %v10213_v33 = vadd.f32 %v10201_v30, %v10187_v7 }
 0x40c   :  { %v10217_v27 = vadd.f32 %v10206_v24, %v10193_v13 }
 0x431   :  { %v7813_v22 = vpop.f32.mrb[8].mxu1 }
 0x432   :  { %v10219_v15 = vand.u32 4294901760, %v7813_v22  ;;  %v5344_v0 = vpop.f32.mrb[9].mxu1 }
 0x433   :  { %v10221_v56 = vand.u32 4294901760, %v5344_v0 }
 0x434   :  { %v10224_v40 = vsub.f32 %v7813_v22, %v10219_v15  ;;  %v7561_v42 = vpop.f32.mrb[8].mxu0 }
 0x435   :  { %v10227_v49 = vsub.f32 %v5344_v0, %v10221_v56  ;;  %v10229_v55 = vand.u32 4294901760, %v7561_v42  ;;  %v4156_v35 = vpop.f32.mrb[9].mxu0 }
 0x436   :  { %v5447_v58 = vand.u32 4294901760, %v10224_v40  ;;  %v10232_v28 = vand.u32 4294901760, %v4156_v35 }
 0x437   :  { %v5437_v50 = vand.u32 4294901760, %v10227_v49  ;;  %v10236_v45 = vsub.f32 %v7561_v42, %v10229_v55 }
 0x438   :  { %v5448_v21 = vsub.f32 %v10224_v40, %v5447_v58  ;;  %v10242_v53 = vsub.f32 %v4156_v35, %v10232_v28 }
 0x439   :  { %v4259_v9 = vand.u32 4294901760, %v10236_v45  ;;  %v5438_v4 = vsub.f32 %v10227_v49, %v5437_v50 }
 0x43a   :  { %v4249_v43 = vand.u32 4294901760, %v10242_v53  ;;  %v5449_v29 = vand.u32 4294901760, %v5448_v21 }
 0x43b   :  { %v4260_v25 = vsub.f32 %v10236_v45, %v4259_v9  ;;  %v5439_v26 = vand.u32 4294901760, %v5438_v4 }
 0x43c   :  { %v4250_v47 = vsub.f32 %v10242_v53, %v4249_v43 }
 0x43d   :  { %7846 = vmatprep.mubr.f32.mxu1 %v5439_v26  ;;  %v4261_v22 = vand.u32 4294901760, %v4260_v25 }
 0x43e   :  { %7847 = vmatmul.mubr.f32.vlgmr.msra.gmra.mrb[10].mxu1 %v5449_v29  ;;  %v4251_v11 = vand.u32 4294901760, %v4250_v47 }
 0x43f   :  { %8947 = vmatpush3.bf16.msra.mxu1 %v9594_v23  ;;  %7881 = vmatprep.mubr.f32.mxu1 %v10221_v56 }
 0x440   :  { %7594 = vmatprep.mubr.f32.mxu0 %v4251_v11  ;;  %8949 = vmatprep.subr.bf16.mxu1 %v9683_v38 }
 0x441   :  { %7595 = vmatmul.mubr.f32.vlgmr.msra.gmra.mrb[10].mxu0 %v4261_v22 }
 0x442   :  { %8731 = vmatpush3.bf16.msra.mxu0 %v9594_v23  ;;  %7629 = vmatprep.mubr.f32.mxu0 %v10232_v28  ;;  %v10498_v23 = vld [vmem:[#allocation16_spill] sm:$0xff] }
 0x443   :  { %8951 = vmatpush3.bf16.msra.mxu1 %v9683_v38  ;;  %8733 = vmatprep.subr.bf16.mxu0 %v9683_v38 }
 0x444   :  { %8953 = vmatprep.subr.bf16.mxu1 %v9696_v63 }
 0x446   :  { %8735 = vmatpush3.bf16.msra.mxu0 %v9683_v38 }
 0x447   :  { %8955 = vmatpush3.bf16.msra.mxu1 %v9696_v63  ;;  %8737 = vmatprep.subr.bf16.mxu0 %v9696_v63 }
 0x448   :  { %8957 = vmatprep.subr.bf16.mxu1 %v9709_v39 }
 0x44a   :  { %8739 = vmatpush3.bf16.msra.mxu0 %v9696_v63 }
 0x44b   :  { %8959 = vmatpush3.bf16.msra.mxu1 %v9709_v39  ;;  %8741 = vmatprep.subr.bf16.mxu0 %v9709_v39 }
 0x44c   :  { %8961 = vmatprep.subr.bf16.mxu1 %v9717_v36 }
 0x44e   :  { %8743 = vmatpush3.bf16.msra.mxu0 %v9709_v39  ;;  %v6063_v39 = vadd.f32 0.0001, %v10213_v33 }
 0x44f   :  { %8963 = vmatpush3.bf16.msra.mxu1 %v9717_v36  ;;  %8745 = vmatprep.subr.bf16.mxu0 %v9717_v36 }
 0x450   :  { %8965 = vmatprep.subr.bf16.mxu1 %v9599_v19 }
 0x452   :  { %8747 = vmatpush3.bf16.msra.mxu0 %v9717_v36 }
 0x453   :  { %8967 = vmatpush3.bf16.msra.mxu1 %v9599_v19  ;;  %8749 = vmatprep.subr.bf16.mxu0 %v9599_v19 }
 0x454   :  { %8969 = vmatprep.subr.bf16.mxu1 %v9605_v62 }
 0x456   :  { %8751 = vmatpush3.bf16.msra.mxu0 %v9599_v19  ;;  %v10499_v19 = vld [vmem:[#allocation17_spill] sm:$0xff] }
 0x457   :  { %8971 = vmatpush3.bf16.msra.mxu1 %v9605_v62  ;;  %8753 = vmatprep.subr.bf16.mxu0 %v9605_v62 }
 0x458   :  { %8973 = vmatprep.subr.bf16.mxu1 %v9607_v31 }
 0x45a   :  { %8755 = vmatpush3.bf16.msra.mxu0 %v9605_v62 }
 0x45b   :  { %8975 = vmatpush3.bf16.msra.mxu1 %v9607_v31  ;;  %8757 = vmatprep.subr.bf16.mxu0 %v9607_v31 }
 0x45c   :  { %8977 = vmatprep.subr.bf16.mxu1 %v9609_v32 }
 0x45e   :  { %7882 = vmatmul.mubr.f32.vlgmr.msra.gmra.mrb[10].mxu1 %v10219_v15  ;;  %8759 = vmatpush3.bf16.msra.mxu0 %v9607_v31 }
 0x45f   :  { %8979 = vmatpush3.bf16.msra.mxu1 %v9609_v32  ;;  %7916 = vmatprep.mubr.f32.mxu1 %v10227_v49 }
 0x460   :  { %8761 = vmatprep.subr.bf16.mxu0 %v9609_v32  ;;  %8981 = vmatprep.subr.bf16.mxu1 %v9742_v12 }
 0x461   :  { %7630 = vmatmul.mubr.f32.vlgmr.msra.gmra.mrb[10].mxu0 %v10229_v55 }
 0x462   :  { %8763 = vmatpush3.bf16.msra.mxu0 %v9609_v32  ;;  %7664 = vmatprep.mubr.f32.mxu0 %v10242_v53 }
 0x463   :  { %8983 = vmatpush3.bf16.msra.mxu1 %v9742_v12  ;;  %8765 = vmatprep.subr.bf16.mxu0 %v9742_v12 }
 0x464   :  { %8985 = vmatprep.subr.bf16.mxu1 %v9752_v20 }
 0x466   :  { %8767 = vmatpush3.bf16.msra.mxu0 %v9742_v12  ;;  %v6062_v12 = vadd.f32 0.0001, %v10217_v27 }
 0x467   :  { %8987 = vmatpush3.bf16.msra.mxu1 %v9752_v20  ;;  %8769 = vmatprep.subr.bf16.mxu0 %v9752_v20 }
 0x468   :  { %8989 = vmatprep.subr.bf16.mxu1 %v9764_v57 }
 0x46a   :  { %8771 = vmatpush3.bf16.msra.mxu0 %v9752_v20 }
 0x46b   :  { %8991 = vmatpush3.bf16.msra.mxu1 %v9764_v57  ;;  %8773 = vmatprep.subr.bf16.mxu0 %v9764_v57 }
 0x46c   :  { %8993 = vmatprep.subr.bf16.mxu1 %v9776_v1 }
 0x46e   :  { %8775 = vmatpush3.bf16.msra.mxu0 %v9764_v57 }
 0x46f   :  { %8995 = vmatpush3.bf16.msra.mxu1 %v9776_v1  ;;  %8777 = vmatprep.subr.bf16.mxu0 %v9776_v1 }
 0x470   :  { %8997 = vmatprep.subr.bf16.mxu1 %v9611_v3 }
 0x472   :  { %8779 = vmatpush3.bf16.msra.mxu0 %v9776_v1 }
 0x473   :  { %8999 = vmatpush3.bf16.msra.mxu1 %v9611_v3  ;;  %8781 = vmatprep.subr.bf16.mxu0 %v9611_v3 }
 0x474   :  { %9001 = vmatprep.subr.bf16.mxu1 %v9613_v52 }
 0x476   :  { %8783 = vmatpush3.bf16.msra.mxu0 %v9611_v3 }
 0x477   :  { %9003 = vmatpush3.bf16.msra.mxu1 %v9613_v52  ;;  %8785 = vmatprep.subr.bf16.mxu0 %v9613_v52 }
 0x478   :  { %9005 = vmatprep.subr.bf16.mxu1 %v9615_v48 }
 0x47a   :  { %8787 = vmatpush3.bf16.msra.mxu0 %v9613_v52 }
 0x47b   :  { %9007 = vmatpush3.bf16.msra.mxu1 %v9615_v48  ;;  %8789 = vmatprep.subr.bf16.mxu0 %v9615_v48 }
 0x47c   :  { %9009 = vmatprep.subr.bf16.mxu1 %v9492_v34 }
 0x47e   :  { %7917 = vmatmul.mubr.f32.vlgmr.msra.gmra.mrb[10].mxu1 %v10224_v40  ;;  %8791 = vmatpush3.bf16.msra.mxu0 %v9615_v48 }
 0x47f   :  { %9011 = vmatpush3.bf16.msra.mxu1 %v9492_v34  ;;  %7951 = vmatprep.mubr.f32.mxu1 %v5437_v50 }
 0x480   :  { %8793 = vmatprep.subr.bf16.mxu0 %v9492_v34  ;;  %9013 = vmatprep.subr.bf16.mxu1 %v9514_v41 }
 0x481   :  { %7665 = vmatmul.mubr.f32.vlgmr.msra.gmra.mrb[10].mxu0 %v10236_v45 }
 0x482   :  { %8795 = vmatpush3.bf16.msra.mxu0 %v9492_v34  ;;  %7699 = vmatprep.mubr.f32.mxu0 %v4249_v43 }
 0x483   :  { %9015 = vmatpush3.bf16.msra.mxu1 %v9514_v41  ;;  %8797 = vmatprep.subr.bf16.mxu0 %v9514_v41 }
 0x484   :  { %9017 = vmatprep.subr.bf16.mxu1 %v9529_v46 }
 0x486   :  { %8799 = vmatpush3.bf16.msra.mxu0 %v9514_v41 }
 0x487   :  { %9019 = vmatpush3.bf16.msra.mxu1 %v9529_v46  ;;  %8801 = vmatprep.subr.bf16.mxu0 %v9529_v46 }
 0x488   :  { %9021 = vmatprep.subr.bf16.mxu1 %v9545_v51 }
 0x48a   :  { %8803 = vmatpush3.bf16.msra.mxu0 %v9529_v46 }
 0x48b   :  { %9023 = vmatpush3.bf16.msra.mxu1 %v9545_v51  ;;  %8805 = vmatprep.subr.bf16.mxu0 %v9545_v51 }
 0x48c   :  { %9025 = vmatprep.subr.bf16.mxu1 %v9557_v54 }
 0x48e   :  { %8807 = vmatpush3.bf16.msra.mxu0 %v9545_v51 }
 0x48f   :  { %9027 = vmatpush3.bf16.msra.mxu1 %v9557_v54  ;;  %8809 = vmatprep.subr.bf16.mxu0 %v9557_v54 }
 0x490   :  { %9029 = vmatprep.subr.bf16.mxu1 %v9567_v59 }
 0x492   :  { %8811 = vmatpush3.bf16.msra.mxu0 %v9557_v54 }
 0x493   :  { %9031 = vmatpush3.bf16.msra.mxu1 %v9567_v59  ;;  %8813 = vmatprep.subr.bf16.mxu0 %v9567_v59 }
 0x494   :  { %9033 = vmatprep.subr.bf16.mxu1 %v9573_v2 }
 0x496   :  { %8815 = vmatpush3.bf16.msra.mxu0 %v9567_v59 }
 0x497   :  { %9035 = vmatpush3.bf16.msra.mxu1 %v9573_v2  ;;  %8817 = vmatprep.subr.bf16.mxu0 %v9573_v2 }
 0x498   :  { %9037 = vmatprep.subr.bf16.mxu1 %v9579_v8 }
 0x49a   :  { %8819 = vmatpush3.bf16.msra.mxu0 %v9573_v2 }
 0x49b   :  { %9039 = vmatpush3.bf16.msra.mxu1 %v9579_v8  ;;  %8821 = vmatprep.subr.bf16.mxu0 %v9579_v8 }
 0x49c   :  { %9041 = vmatprep.subr.bf16.mxu1 %v9591_v16 }
 0x49e   :  { %7952 = vmatmul.mubr.f32.vlgmr.msra.gmra.mrb[10].mxu1 %v5447_v58  ;;  %8823 = vmatpush3.bf16.msra.mxu0 %v9579_v8 }
 0x49f   :  { %9043 = vmatpush3.bf16.msra.mxu1 %v9591_v16  ;;  %7986 = vmatprep.mubr.f32.mxu1 %v10221_v56 }
 0x4a0   :  { %8825 = vmatprep.subr.bf16.mxu0 %v9591_v16  ;;  %9045 = vmatprep.subr.bf16.mxu1 %v9664_v60 }
 0x4a1   :  { %7700 = vmatmul.mubr.f32.vlgmr.msra.gmra.mrb[10].mxu0 %v4259_v9 }
 0x4a2   :  { %8827 = vmatpush3.bf16.msra.mxu0 %v9591_v16  ;;  %7734 = vmatprep.mubr.f32.mxu0 %v10232_v28  ;;  %v10497_v16 = vld [vmem:[#allocation15_spill] sm:$0xff] }
 0x4a3   :  { %9047 = vmatpush3.bf16.msra.mxu1 %v9664_v60  ;;  %8829 = vmatprep.subr.bf16.mxu0 %v9664_v60 }
 0x4a4   :  { %9049 = vmatprep.subr.bf16.mxu1 %v9692_v61 }
 0x4a6   :  { %8831 = vmatpush3.bf16.msra.mxu0 %v9664_v60 }
 0x4a7   :  { %9051 = vmatpush3.bf16.msra.mxu1 %v9692_v61  ;;  %8833 = vmatprep.subr.bf16.mxu0 %v9692_v61 }
 0x4a8   :  { %9053 = vmatprep.subr.bf16.mxu1 %v9698_v44 }
 0x4aa   :  { %8835 = vmatpush3.bf16.msra.mxu0 %v9692_v61 }
 0x4ab   :  { %9055 = vmatpush3.bf16.msra.mxu1 %v9698_v44  ;;  %8837 = vmatprep.subr.bf16.mxu0 %v9698_v44 }
 0x4ac   :  { %9057 = vmatprep.subr.bf16.mxu1 %v9711_v6 }
 0x4ae   :  { %8839 = vmatpush3.bf16.msra.mxu0 %v9698_v44 }
 0x4af   :  { %9059 = vmatpush3.bf16.msra.mxu1 %v9711_v6  ;;  %8841 = vmatprep.subr.bf16.mxu0 %v9711_v6 }
 0x4b0   :  { %9061 = vmatprep.subr.bf16.mxu1 %v10497_v16 }
 0x4b2   :  { %8843 = vmatpush3.bf16.msra.mxu0 %v9711_v6 }
 0x4b3   :  { %9063 = vmatpush3.bf16.msra.mxu1 %v10497_v16  ;;  %8845 = vmatprep.subr.bf16.mxu0 %v10497_v16 }
 0x4b4   :  { %9065 = vmatprep.subr.bf16.mxu1 %v10498_v23 }
 0x4b6   :  { %8847 = vmatpush3.bf16.msra.mxu0 %v10497_v16 }
 0x4b7   :  { %9067 = vmatpush3.bf16.msra.mxu1 %v10498_v23  ;;  %8849 = vmatprep.subr.bf16.mxu0 %v10498_v23 }
 0x4b8   :  { %9069 = vmatprep.subr.bf16.mxu1 %v10499_v19 }
 0x4ba   :  { %8851 = vmatpush3.bf16.msra.mxu0 %v10498_v23 }
 0x4bb   :  { %9071 = vmatpush3.bf16.msra.mxu1 %v10499_v19  ;;  %8853 = vmatprep.subr.bf16.mxu0 %v10499_v19 }
 0x4bc   :  { %9073 = vmatprep.subr.bf16.mxu1 %v9492_v34 }
 0x4be   :  { %7987 = vmatmul.mubr.f32.vlgmr.msra.gmra.mrb[10].mxu1 %v10219_v15  ;;  %8855 = vmatpush3.bf16.msra.mxu0 %v10499_v19 }
 0x4bf   :  { %9075 = vmatpush3.bf16.msra.mxu1 %v9492_v34  ;;  %8021 = vmatprep.mubr.f32.mxu1 %v10221_v56 }
 0x4c0   :  { %8857 = vmatprep.subr.bf16.mxu0 %v9492_v34  ;;  %9077 = vmatprep.subr.bf16.mxu1 %v9514_v41 }
 0x4c1   :  { %7735 = vmatmul.mubr.f32.vlgmr.msra.gmra.mrb[10].mxu0 %v10229_v55 }
 0x4c2   :  { %8859 = vmatpush3.bf16.msra.mxu0 %v9492_v34  ;;  %7769 = vmatprep.mubr.f32.mxu0 %v10232_v28 }
 0x4c3   :  { %9079 = vmatpush3.bf16.msra.mxu1 %v9514_v41  ;;  %8861 = vmatprep.subr.bf16.mxu0 %v9514_v41 }
 0x4c4   :  { %9081 = vmatprep.subr.bf16.mxu1 %v9529_v46 }
 0x4c6   :  { %8863 = vmatpush3.bf16.msra.mxu0 %v9514_v41  ;;  %v6051_v41 = vmul.f32 2.0, %v10204_v5 }
 0x4c7   :  { %9083 = vmatpush3.bf16.msra.mxu1 %v9529_v46  ;;  %8865 = vmatprep.subr.bf16.mxu0 %v9529_v46 }
 0x4c8   :  { %9085 = vmatprep.subr.bf16.mxu1 %v9545_v51  ;;  %v6053_v52 = vadd.f32 0.0001, %v6051_v41 }
 0x4ca   :  { %8867 = vmatpush3.bf16.msra.mxu0 %v9529_v46 }
 0x4cb   :  { %9087 = vmatpush3.bf16.msra.mxu1 %v9545_v51  ;;  %8869 = vmatprep.subr.bf16.mxu0 %v9545_v51 }
 0x4cc   :  { %9089 = vmatprep.subr.bf16.mxu1 %v9557_v54 }
 0x4ce   :  { %8871 = vmatpush3.bf16.msra.mxu0 %v9545_v51 }
 0x4cf   :  { %9091 = vmatpush3.bf16.msra.mxu1 %v9557_v54  ;;  %8873 = vmatprep.subr.bf16.mxu0 %v9557_v54 }
 0x4d0   :  { %9093 = vmatprep.subr.bf16.mxu1 %v9567_v59 }
 0x4d2   :  { %8875 = vmatpush3.bf16.msra.mxu0 %v9557_v54  ;;  %v6050_v54 = vmul.f32 2.0, %v10209_v37 }
 0x4d3   :  { %9095 = vmatpush3.bf16.msra.mxu1 %v9567_v59  ;;  %8877 = vmatprep.subr.bf16.mxu0 %v9567_v59 }
 0x4d4   :  { %9097 = vmatprep.subr.bf16.mxu1 %v9573_v2  ;;  %v6052_v60 = vadd.f32 0.0001, %v6050_v54 }
 0x4d6   :  { %8879 = vmatpush3.bf16.msra.mxu0 %v9567_v59 }
 0x4d7   :  { %9099 = vmatpush3.bf16.msra.mxu1 %v9573_v2  ;;  %8881 = vmatprep.subr.bf16.mxu0 %v9573_v2 }
 0x4d8   :  { %9101 = vmatprep.subr.bf16.mxu1 %v9579_v8 }
 0x4da   :  { %8883 = vmatpush3.bf16.msra.mxu0 %v9573_v2 }
 0x4db   :  { %9103 = vmatpush3.bf16.msra.mxu1 %v9579_v8  ;;  %8885 = vmatprep.subr.bf16.mxu0 %v9579_v8 }
 0x4de   :  { %8022 = vmatmul.mubr.f32.vlgmr.msra.gmra.mrb[10].mxu1 %v10219_v15  ;;  %8887 = vmatpush3.bf16.msra.mxu0 %v9579_v8 }
 0x4e1   :  { %7770 = vmatmul.mubr.f32.vlgmr.msra.gmra.mrb[10].mxu0 %v10229_v55 }
 0x5b1   :  { %v8023_v34 = vpop.f32.mrb[10].mxu1 }
 0x5b2   :  { %v6049_v46 = vsub.f32 %v8023_v34, %v10204_v5  ;;  %v6028_v51 = vpop.f32.mrb[11].mxu1 }
 0x5b3   :  { %v6048_v59 = vsub.f32 %v6028_v51, %v10209_v37 }
 0x5b4   :  { %v6055_v2 = vmul.f32 2.0, %v6049_v46  ;;  %v7771_v62 = vpop.f32.mrb[10].mxu0 }
 0x5b5   :  { %v6054_v31 = vmul.f32 2.0, %v6048_v59  ;;  %v6047_v32 = vsub.f32 %v7771_v62, %v10201_v30  ;;  %v4840_v3 = vpop.f32.mrb[11].mxu0 }
 0x5b6   :  { %v6057_v8 = vadd.f32 0.0009, %v6055_v2  ;;  %v6046_v48 = vsub.f32 %v4840_v3, %v10206_v24 }
 0x5b7   :  { %v6056_v38 = vadd.f32 0.0009, %v6054_v31  ;;  %v6065_v61 = vadd.f32 %v6047_v32, %v6045_v14 }
 0x5b8   :  { %v6059_v63 = vmul.f32 %v6057_v8, %v6053_v52  ;;  %v6064_v44 = vadd.f32 %v6046_v48, %v6044_v18 }
 0x5b9   :  { %v6058_v6 = vmul.f32 %v6056_v38, %v6052_v60  ;;  %v6067_v36 = vadd.f32 0.0009, %v6065_v61 }
 0x5ba   :  { %v6066_v20 = vadd.f32 0.0009, %v6064_v44 }
 0x5bb   :  { %v6069_v57 = vmul.f32 %v6067_v36, %v6063_v39 }
 0x5bc   :  { %v6068_v1 = vmul.f32 %v6066_v20, %v6062_v12 }
 0x5bd   :  { %9213 = vrcp.f32 %v6069_v57 }
 0x5be   :  { %9215 = vrcp.f32 %v6068_v1 }
 0x5c7   :  { %v9214_v30 = vpop.eup %9213 }
 0x5c8   :  { %v9216_v5 = vpop.eup %9215  ;;  %v6073_v7 = vmul.f32 %v9214_v30, %v6059_v63 }
 0x5c9   :  { %v6071_v10 = vmul.f32 %v9216_v5, %v6058_v6 }
 0x5cb   :  { %v6074_v14 = vadd.f32 %v6073_v7, %v6071_v10 }
 0x5cd   :  { %6075 = vadd.xlane.f32.xlu0 %v6074_v14 }
 0x65a   :  { %v6076_v24 = vpop.xlane.xlu0 %6075 }
 0x65b   :  { %v6077_v13 = vrot.slane %v6076_v24, 4 }
 0x65d   :  { %v6078_v17 = vadd.f32 %v6077_v13, %v6076_v24 }
 0x65f   :  { %v6079_v18 = vrot.slane %v6078_v17, 2 }
 0x661   :  { %v6080_v37 = vadd.f32 %v6079_v18, %v6078_v17 }
 0x663   :  { %v6081_v33 = vrot.slane %v6080_v37, 1 }
 0x665   :  { %v6082_v15 = vadd.f32 %v6081_v33, %v6080_v37 }
 0x667   :  { %9204 = vpush %v6082_v15 }
 0x698   :  { %s9205_s28 = spop %9204 }
 0x699   :  { %v6084_v27 = vstv %s9205_s28 }
 0x69a   :  { %6086 = vst [vmem:[#allocation10] sm:$0xff] %v6084_v27 }
 0x69b   :  { %9318 = shalt.err (!%p9315_p8)
}
 0x69c   :  { %s9319_s14 = scalar_lea.hbm %s10467_s4, 128 }
 0x69d   :  { %p9320_p9 = scmp.ne.s32.totalorder %s10467_s4, %s9319_s14  ;;  %p9323_p10 = scmp.lt.u32.totalorder %s9319_s14, %s10467_s4 }
 0x69f   :  { %p9325_p11 = pnand %p9323_p10, %p9320_p9 }
 0x6a1   :  { %9328 = shalt.err (!%p9325_p11)
}
 0x6a2   :  { %6096 = dma.vmem_to_hbm [thread:$0]  %s6094_s27, 128, %s10467_s4, [#allocation4]  }
 0x6a3   :  { %9335 = dma.done.wait [#allocation4], 128  }
 0x6a4   :  { %9336 = vsyncadd [#allocation4], 4294967168 }
 0x6a5   :  { %6100 = vsyncpa [#allocation3], 1 }
 0x6a6   :  { %6101 = vsyncpa [#allocation6], 1 }
 0x6a7   :  { %6102 = vsyncpa [#allocation9], 1 }
 0x6a8   :  { %6103 = vsyncpa [#allocation4], 1 }

</bundles_post_ra>
